<compile_context>
chip_gen: v5e
topology: v5e:2x2
jax: 0.10.0
libtpu: 0.0.40
codegen_flags: <defaults>
</compile_context>

<pallas_src>
import functools

import jax
import jax.numpy as jnp
import numpy as np
from jax import lax
from jax.experimental import pallas as pl
from jax.experimental.pallas import tpu as pltpu

_DEF_PRECISION = lax.Precision.HIGH      # 3-pass bf16 emulation of f32 matmul
_REF_PRECISION = lax.Precision.HIGHEST   # reference stays maximally accurate

_K_OFF = 8        # i-group padded to one 8-row sublane block
_DENOM_ROW = 1    # packed-ikv row with zero weight / bias 1 -> constant one


def _round_up(x, m):
    return ((x + m - 1) // m) * m


def _attention_kernel(x_ref, w_ikv_ref, b_ikv_ref, w_o_ref, b_o_ref,
                      pool_ref, unpool_ref, o_ref, *, embed_dim, v_off,
                      precision):
    d = embed_dim
    x = x_ref[0]                          # (D, NB): channels->sublanes, pixels->lanes

    # Fused i/k/v projection (1x1 conv == matmul): one MXU dispatch.
    ikv = jnp.dot(w_ikv_ref[...], x, precision=precision,
                  preferred_element_type=jnp.float32)
    ikv = ikv + b_ikv_ref[...].astype(jnp.float32)            # (C, NB) f32

    i_row = ikv[0:1, :]                   # (1, NB) attention logits
    unpool = unpool_ref[...]              # (TH, NB) resident 0/1 mask, lane-dense

    # Per-image-row max for a numerically safe softmax (no 0/0 if rows have
    # very different logit magnitudes); broadcast back via the 0/1 mask.
    masked = jnp.where(unpool > 0.0, i_row, -jnp.inf)          # (TH, NB)
    row_max = jnp.max(masked, axis=-1, keepdims=True)          # (TH, 1)
    max_b = jnp.sum(unpool * row_max, axis=0, keepdims=True)   # (1, NB)
    e = jnp.exp(i_row - max_b)                                 # (1, NB), <= 1

    # Fused denominator + context pooling: rows [i, 1, 0.., k] of the packed
    # projection scaled by e, ONE matmul against the resident pool mask.
    fused = ikv[0:_K_OFF + d, :] * e                           # (8+D, NB)
    pooled = jnp.dot(fused, pool_ref[...], precision=precision,
                     preferred_element_type=jnp.float32)       # (8+D, TH)
    denom = pooled[_DENOM_ROW:_DENOM_ROW + 1, :]               # (1, TH)  sum_row e
    ctx = pooled[_K_OFF:_K_OFF + d, :]                         # (D, TH)  sum_row k*e
    ctx = ctx * pl.reciprocal(denom, approx=False)             # normalise once per row
    ctx_b = jnp.dot(ctx, unpool, precision=precision,
                    preferred_element_type=jnp.float32)        # (D, NB) broadcast over W

    # dropout(p=0) is the identity; omitted.
    v = ikv[v_off:v_off + d, :]                                # (D, NB)
    out_pre = jnp.maximum(v, 0.0) * ctx_b
    out = jnp.dot(w_o_ref[...], out_pre.astype(w_o_ref.dtype),
                  precision=precision, preferred_element_type=jnp.float32)
    out = out + b_o_ref[...].astype(jnp.float32)               # (D, NB)
    o_ref[0] = out.astype(o_ref.dtype)


def _pick_block_rows(h, w, max_lanes, batch):
    """Largest H-divisor TH with a legal lane count, preferring >=2 grid steps."""
    cands = []
    for cand in range(h, 0, -1):
        if h % cand:
            continue
        lanes = cand * w
        if lanes > max_lanes:
            continue
        if cand != h and lanes % 128 != 0:
            continue
        cands.append(cand)
    if not cands:
        # TODO(synk): pad W up to a 128-friendly width instead of refusing.
        raise ValueError(
            f"no legal row blocking for H={h}, W={w}, "
            f"max_block_lanes={max_lanes}; pass block_rows= explicitly")
    multi = [c for c in cands if batch * (h // c) >= 2]   # feed both v7x cores
    return multi[0] if multi else cands[0]


def _vmem_bytes_estimate(d, nb, c, th, x_itemsize, out_itemsize):
    """Rough per-step VMEM footprint (double-buffered tiles + resident operands)."""
    f32, lane = 4, 128
    act = 2 * d * nb * x_itemsize + 2 * d * nb * out_itemsize
    weights = 2 * f32 * (c * d + c * lane + d * d + d * lane)
    pools = 2 * f32 * (nb * max(th, lane) + _round_up(th, 8) * nb)
    interm = f32 * (c + 3 * d + 2 * _K_OFF) * nb
    return act + weights + pools + interm


def attention_pallas(x_nchw, w_i, b_i, w_k, b_k, w_v, b_v, w_o, b_o, *,
                     block_rows=None, max_block_lanes=2048,
                     precision=_DEF_PRECISION):
    """MobileViTv2 Attention forward.

    x_nchw: (B, D, H, W).  1x1-conv weights in PyTorch (out_ch, in_ch) layout:
    w_i (1, D), w_k/w_v/w_o (D, D); biases as (out_ch,) vectors.
    """
    B, D, H, W = x_nchw.shape

    # Pack i/k/v into one (C, D) weight; every group is padded to a sublane
    # (8-row) boundary so in-kernel slices stay vreg-aligned.  Row _DENOM_ROW
    # has zero weight and bias 1 -> a constant-one channel that rides the
    # pooling matmul and produces the softmax denominator for free.
    v_off = _K_OFF + _round_up(D, 8)
    C = v_off + _round_up(D, 8)
    wdtype = w_k.dtype
    w_ikv = jnp.zeros((C, D), wdtype)
    w_ikv = w_ikv.at[0:1, :].set(w_i)
    w_ikv = w_ikv.at[_K_OFF:_K_OFF + D, :].set(w_k)
    w_ikv = w_ikv.at[v_off:v_off + D, :].set(w_v)
    b_ikv = jnp.zeros((C, 1), wdtype)
    b_ikv = b_ikv.at[0, 0].set(b_i[0])
    b_ikv = b_ikv.at[_DENOM_ROW, 0].set(1.0)
    b_ikv = b_ikv.at[_K_OFF:_K_OFF + D, 0].set(b_k)
    b_ikv = b_ikv.at[v_off:v_off + D, 0].set(b_v)
    b_o2 = b_o.reshape(D, 1)

    # (B, D, H, W) -> (B, D, H*W) is metadata-only (contiguous): no transpose
    # round trip, kernel last dim stays lane-dense.
    x2 = x_nchw.reshape(B, D, H * W)

    TH = (_pick_block_rows(H, W, max_block_lanes, B)
          if block_rows is None else block_rows)
    if H % TH != 0:
        raise ValueError(f"block_rows={TH} must divide H={H}")
    NB = TH * W
    if TH != H and NB % 128 != 0:
        raise ValueError("block_rows*W must be a multiple of 128 (or block_rows == H)")
    HP = H // TH

    # 0/1 segment pooling masks (pixel <-> local image row), built ONCE here and
    # kept resident in VMEM via a constant index_map (not rebuilt per grid step).
    row_of = np.arange(NB) // W
    pool_np = (row_of[:, None] == np.arange(TH)[None, :]).astype(np.float32)
    pool = jnp.asarray(pool_np)        # (NB, TH)
    unpool = jnp.asarray(pool_np.T)    # (TH, NB) lane-dense

    # Generation-aware VMEM budget (v5e/v6e: 128 MiB, v7x: 64 MiB per core).
    need = _vmem_bytes_estimate(D, NB, C, TH, x_nchw.dtype.itemsize,
                                x_nchw.dtype.itemsize)
    try:
        vmem_cap = int(getattr(pltpu.get_tpu_info(), "vmem_capacity_bytes", 0)) \
            or 64 * 1024 * 1024
    except Exception:
        vmem_cap = 64 * 1024 * 1024
    vmem_limit = int(min(max(2 * need, 32 * 1024 * 1024), int(0.75 * vmem_cap)))

    def _build(prec):
        kernel = functools.partial(_attention_kernel, embed_dim=D, v_off=v_off,
                                   precision=prec)
        return pl.pallas_call(
            kernel,
            out_shape=jax.ShapeDtypeStruct((B, D, H * W), x_nchw.dtype),
            grid_spec=pltpu.PrefetchScalarGridSpec(
                num_scalar_prefetch=0,
                grid=(B, HP),
                in_specs=[
                    pl.BlockSpec((1, D, NB), lambda b, h: (b, 0, h)),  # activations
                    pl.BlockSpec((C, D), lambda b, h: (0, 0)),         # packed ikv weight
                    pl.BlockSpec((C, 1), lambda b, h: (0, 0)),         # packed ikv bias
                    pl.BlockSpec((D, D), lambda b, h: (0, 0)),         # output proj weight
                    pl.BlockSpec((D, 1), lambda b, h: (0, 0)),         # output proj bias
                    pl.BlockSpec((NB, TH), lambda b, h: (0, 0)),       # pool mask (resident)
                    pl.BlockSpec((TH, NB), lambda b, h: (0, 0)),       # unpool mask (resident)
                ],
                out_specs=pl.BlockSpec((1, D, NB), lambda b, h: (b, 0, h)),
            ),
            compiler_params=pltpu.CompilerParams(
                dimension_semantics=("parallel", "parallel"),
                vmem_limit_bytes=vmem_limit,
            ),
        )(x2, w_ikv, b_ikv, w_o, b_o2, pool, unpool)

    try:
        out2 = _build(precision)
    except Exception:
        if precision == lax.Precision.HIGHEST:
            raise
        # Some Mosaic versions only lower DEFAULT/HIGHEST matmul precision.
        out2 = _build(lax.Precision.HIGHEST)

    return out2.reshape(B, D, H, W)   # free reshape back to NCHW


def attention_reference(x, w_i, b_i, w_k, b_k, w_v, b_v, w_o, b_o):
    """Pure-JAX reference matching the PyTorch forward pass (NCHW)."""
    p = _REF_PRECISION
    i = jnp.einsum('oc,bchw->bohw', w_i, x, precision=p) + b_i[None, :, None, None]
    k = jnp.einsum('oc,bchw->bohw', w_k, x, precision=p) + b_k[None, :, None, None]
    v = jnp.einsum('oc,bchw->bohw', w_v, x, precision=p) + b_v[None, :, None, None]
    scores = jax.nn.softmax(i, axis=-1)                       # softmax over W (torch dim=-1)
    ctx = jnp.sum(k * scores, axis=-1, keepdims=True)         # (B, D, H, 1)
    out = jnp.maximum(v, 0.0) * ctx
    return jnp.einsum('oc,bchw->bohw', w_o, out, precision=p) + b_o[None, :, None, None]


if __name__ == "__main__":
    B, D, H, W = 2, 8, 16, 16   # batch, embed_dim, spatial H, spatial W
    key = jax.random.PRNGKey(0)
    ks = jax.random.split(key, 9)

    x = jax.random.normal(ks[0], (B, D, H, W), dtype=jnp.float32)

    # ikv_proj: Conv2d(D, 1 + 2D, kernel_size=1, bias=True) split into i/k/v;
    # weights in PyTorch conv (out_ch, in_ch) layout, biases (out_ch,).
    s = 1.0 / np.sqrt(D)
    w_i = jax.random.normal(ks[1], (1, D), jnp.float32) * s
    b_i = jax.random.normal(ks[2], (1,), jnp.float32) * s
    w_k = jax.random.normal(ks[3], (D, D), jnp.float32) * s
    b_k = jax.random.normal(ks[4], (D,), jnp.float32) * s
    w_v = jax.random.normal(ks[5], (D, D), jnp.float32) * s
    b_v = jax.random.normal(ks[6], (D,), jnp.float32) * s
    # output_projection: Conv2d(D, D, kernel_size=1, bias=True)
    w_o = jax.random.normal(ks[7], (D, D), jnp.float32) * s
    b_o = jax.random.normal(ks[8], (D,), jnp.float32) * s

    ref = attention_reference(x, w_i, b_i, w_k, b_k, w_v, b_v, w_o, b_o)

    # Default blocking (full-H blocks per grid step, grid (B, 1)).
    out = attention_pallas(x, w_i, b_i, w_k, b_k, w_v, b_v, w_o, b_o)
    out = jax.block_until_ready(out)
    np.testing.assert_allclose(np.asarray(out), np.asarray(ref), rtol=2e-4, atol=2e-5)

    # Multi-block path (TH < H, 128-lane blocks, grid (2, 2)).
    out_b = attention_pallas(x, w_i, b_i, w_k, b_k, w_v, b_v, w_o, b_o, block_rows=8)
    out_b = jax.block_until_ready(out_b)
    np.testing.assert_allclose(np.asarray(out_b), np.asarray(ref), rtol=2e-4, atol=2e-5)

    print("KERNEL_OK")
</pallas_src>

<mosaic_0001>
module attributes {stable_mosaic.version = 11 : i64} {
  func.func @_attention_kernel(%arg0: i32, %arg1: i32, %arg2: memref<1x8x256xf32, #tpu.memory_space<vmem>>, %arg3: memref<24x8xf32, #tpu.memory_space<vmem>>, %arg4: memref<24x1xf32, #tpu.memory_space<vmem>>, %arg5: memref<8x8xf32, #tpu.memory_space<vmem>>, %arg6: memref<8x1xf32, #tpu.memory_space<vmem>>, %arg7: memref<256x16xf32, #tpu.memory_space<vmem>>, %arg8: memref<16x256xf32, #tpu.memory_space<vmem>>, %arg9: memref<1x8x256xf32, #tpu.memory_space<vmem>>) attributes {dimension_semantics = [#tpu.dimension_semantics<parallel>, #tpu.dimension_semantics<parallel>], iteration_bounds = array<i64: 2, 1>, scalar_prefetch = 0 : i64, scratch_operands = 0 : i64, tpu.core_type = #tpu.core_type<tc>, window_params = [{transform_indices = @transform_0, window_bounds = array<i64: 1, 8, 256>}, {pipeline_mode = #tpu.pipeline_mode<synchronous>, transform_indices = @transform_1, window_bounds = array<i64: 24, 8>}, {pipeline_mode = #tpu.pipeline_mode<synchronous>, transform_indices = @transform_2, window_bounds = array<i64: 24, 1>}, {pipeline_mode = #tpu.pipeline_mode<synchronous>, transform_indices = @transform_3, window_bounds = array<i64: 8, 8>}, {pipeline_mode = #tpu.pipeline_mode<synchronous>, transform_indices = @transform_4, window_bounds = array<i64: 8, 1>}, {pipeline_mode = #tpu.pipeline_mode<synchronous>, transform_indices = @transform_5, window_bounds = array<i64: 256, 16>}, {pipeline_mode = #tpu.pipeline_mode<synchronous>, transform_indices = @transform_6, window_bounds = array<i64: 16, 256>}, {transform_indices = @transform_7, window_bounds = array<i64: 1, 8, 256>}]} {
    %c0 = arith.constant 0 : index
    %c0_0 = arith.constant 0 : index
    %c0_1 = arith.constant 0 : index
    %0 = vector.load %arg2[%c0, %c0_0, %c0_1] : memref<1x8x256xf32, #tpu.memory_space<vmem>>, vector<1x8x256xf32>
    %1 = vector.shape_cast %0 : vector<1x8x256xf32> to vector<8x256xf32>
    %c0_2 = arith.constant 0 : index
    %c0_3 = arith.constant 0 : index
    %2 = vector.load %arg3[%c0_2, %c0_3] : memref<24x8xf32, #tpu.memory_space<vmem>>, vector<24x8xf32>
    %cst = arith.constant dense<0.000000e+00> : vector<24x256xf32>
    %3 = tpu.matmul %2, %1, %cst {dimension_numbers = #tpu.dot_dimension_numbers<[1], [0], [0], [1], [0, 0, 1, 1], [], []>, precision = #tpu.contract_precision<fp32>} : vector<24x8xf32>, vector<8x256xf32>, vector<24x256xf32> -> vector<24x256xf32>
    %c0_4 = arith.constant 0 : index
    %c0_5 = arith.constant 0 : index
    %4 = vector.load %arg4[%c0_4, %c0_5] : memref<24x1xf32, #tpu.memory_space<vmem>>, vector<24x1xf32>
    %5 = vector.broadcast %4 : vector<24x1xf32> to vector<24x256xf32>
    %6 = arith.addf %3, %5 : vector<24x256xf32>
    %7 = vector.extract_strided_slice %6 {offsets = [0, 0], sizes = [1, 256], strides = [1, 1]} : vector<24x256xf32> to vector<1x256xf32>
    %c0_6 = arith.constant 0 : index
    %c0_7 = arith.constant 0 : index
    %8 = vector.load %arg8[%c0_6, %c0_7] : memref<16x256xf32, #tpu.memory_space<vmem>>, vector<16x256xf32>
    %cst_8 = arith.constant 0.000000e+00 : f32
    %9 = vector.broadcast %cst_8 : f32 to vector<16x256xf32>
    %10 = arith.cmpf ogt, %8, %9 : vector<16x256xf32>
    %cst_9 = arith.constant 0xFF800000 : f32
    %11 = vector.shape_cast %7 : vector<1x256xf32> to vector<1x256xf32>
    %12 = vector.broadcast %11 : vector<1x256xf32> to vector<16x256xf32>
    %13 = vector.broadcast %cst_9 : f32 to vector<16x256xf32>
    %14 = arith.select %10, %12, %13 : vector<16x256xi1>, vector<16x256xf32>
    %cst_10 = arith.constant dense<0xFF800000> : vector<16xf32>
    %15 = vector.multi_reduction <maximumf>, %14, %cst_10 [1] : vector<16x256xf32> to vector<16xf32>
    %16 = vector.shape_cast %15 : vector<16xf32> to vector<16x1xf32>
    %17 = vector.broadcast %16 : vector<16x1xf32> to vector<16x256xf32>
    %18 = arith.mulf %8, %17 : vector<16x256xf32>
    %cst_11 = arith.constant dense<0.000000e+00> : vector<256xf32>
    %19 = vector.multi_reduction <add>, %18, %cst_11 [0] : vector<16x256xf32> to vector<256xf32>
    %20 = vector.shape_cast %19 : vector<256xf32> to vector<1x256xf32>
    %21 = arith.subf %7, %20 : vector<1x256xf32>
    %22 = math.exp %21 : vector<1x256xf32>
    %23 = vector.extract_strided_slice %6 {offsets = [0, 0], sizes = [16, 256], strides = [1, 1]} : vector<24x256xf32> to vector<16x256xf32>
    %24 = vector.broadcast %22 : vector<1x256xf32> to vector<16x256xf32>
    %25 = arith.mulf %23, %24 : vector<16x256xf32>
    %c0_12 = arith.constant 0 : index
    %c0_13 = arith.constant 0 : index
    %26 = vector.load %arg7[%c0_12, %c0_13] : memref<256x16xf32, #tpu.memory_space<vmem>>, vector<256x16xf32>
    %cst_14 = arith.constant dense<0.000000e+00> : vector<16x16xf32>
    %27 = tpu.matmul %25, %26, %cst_14 {dimension_numbers = #tpu.dot_dimension_numbers<[1], [0], [0], [1], [0, 0, 1, 1], [], []>, precision = #tpu.contract_precision<fp32>} : vector<16x256xf32>, vector<256x16xf32>, vector<16x16xf32> -> vector<16x16xf32>
    %28 = vector.extract_strided_slice %27 {offsets = [1, 0], sizes = [1, 16], strides = [1, 1]} : vector<16x16xf32> to vector<1x16xf32>
    %29 = vector.extract_strided_slice %27 {offsets = [8, 0], sizes = [8, 16], strides = [1, 1]} : vector<16x16xf32> to vector<8x16xf32>
    %30 = tpu.reciprocal %28 : vector<1x16xf32> -> vector<1x16xf32>
    %31 = vector.broadcast %30 : vector<1x16xf32> to vector<8x16xf32>
    %32 = arith.mulf %29, %31 : vector<8x16xf32>
    %cst_15 = arith.constant dense<0.000000e+00> : vector<8x256xf32>
    %33 = tpu.matmul %32, %8, %cst_15 {dimension_numbers = #tpu.dot_dimension_numbers<[1], [0], [0], [1], [0, 0, 1, 1], [], []>, precision = #tpu.contract_precision<fp32>} : vector<8x16xf32>, vector<16x256xf32>, vector<8x256xf32> -> vector<8x256xf32>
    %34 = vector.extract_strided_slice %6 {offsets = [16, 0], sizes = [8, 256], strides = [1, 1]} : vector<24x256xf32> to vector<8x256xf32>
    %cst_16 = arith.constant 0.000000e+00 : f32
    %35 = vector.broadcast %cst_16 : f32 to vector<8x256xf32>
    %36 = arith.maximumf %34, %35 : vector<8x256xf32>
    %37 = arith.mulf %36, %33 : vector<8x256xf32>
    %c0_17 = arith.constant 0 : index
    %c0_18 = arith.constant 0 : index
    %38 = vector.load %arg5[%c0_17, %c0_18] : memref<8x8xf32, #tpu.memory_space<vmem>>, vector<8x8xf32>
    %cst_19 = arith.constant dense<0.000000e+00> : vector<8x256xf32>
    %39 = tpu.matmul %38, %37, %cst_19 {dimension_numbers = #tpu.dot_dimension_numbers<[1], [0], [0], [1], [0, 0, 1, 1], [], []>, precision = #tpu.contract_precision<fp32>} : vector<8x8xf32>, vector<8x256xf32>, vector<8x256xf32> -> vector<8x256xf32>
    %c0_20 = arith.constant 0 : index
    %c0_21 = arith.constant 0 : index
    %40 = vector.load %arg6[%c0_20, %c0_21] : memref<8x1xf32, #tpu.memory_space<vmem>>, vector<8x1xf32>
    %41 = vector.broadcast %40 : vector<8x1xf32> to vector<8x256xf32>
    %42 = arith.addf %39, %41 : vector<8x256xf32>
    %c0_22 = arith.constant 0 : index
    %c0_23 = arith.constant 0 : index
    %c0_24 = arith.constant 0 : index
    %43 = vector.load %arg9[%c0_22, %c0_23, %c0_24] : memref<1x8x256xf32, #tpu.memory_space<vmem>>, vector<1x8x256xf32>
    %44 = vector.shape_cast %43 : vector<1x8x256xf32> to vector<8x256xf32>
    %45 = vector.shape_cast %42 : vector<8x256xf32> to vector<1x8x256xf32>
    tpu.vector_store %arg9[%c0_22, %c0_23, %c0_24], %45 {strides = array<i32>} : memref<1x8x256xf32, #tpu.memory_space<vmem>>, vector<1x8x256xf32>,
    return
  }
  func.func @transform_0(%arg0: i32, %arg1: i32) -> (i32, i32, i32) {
    %c0_i32 = arith.constant 0 : i32
    %c0_i32_0 = arith.constant 0 : i32
    return %arg0, %c0_i32, %arg1 : i32, i32, i32
  }
  func.func @transform_1(%arg0: i32, %arg1: i32) -> (i32, i32) {
    %c0_i32 = arith.constant 0 : i32
    %c0_i32_0 = arith.constant 0 : i32
    %c0_i32_1 = arith.constant 0 : i32
    return %c0_i32, %c0_i32_0 : i32, i32
  }
  func.func @transform_2(%arg0: i32, %arg1: i32) -> (i32, i32) {
    %c0_i32 = arith.constant 0 : i32
    %c0_i32_0 = arith.constant 0 : i32
    %c0_i32_1 = arith.constant 0 : i32
    return %c0_i32, %c0_i32_0 : i32, i32
  }
  func.func @transform_3(%arg0: i32, %arg1: i32) -> (i32, i32) {
    %c0_i32 = arith.constant 0 : i32
    %c0_i32_0 = arith.constant 0 : i32
    %c0_i32_1 = arith.constant 0 : i32
    return %c0_i32, %c0_i32_0 : i32, i32
  }
  func.func @transform_4(%arg0: i32, %arg1: i32) -> (i32, i32) {
    %c0_i32 = arith.constant 0 : i32
    %c0_i32_0 = arith.constant 0 : i32
    %c0_i32_1 = arith.constant 0 : i32
    return %c0_i32, %c0_i32_0 : i32, i32
  }
  func.func @transform_5(%arg0: i32, %arg1: i32) -> (i32, i32) {
    %c0_i32 = arith.constant 0 : i32
    %c0_i32_0 = arith.constant 0 : i32
    %c0_i32_1 = arith.constant 0 : i32
    return %c0_i32, %c0_i32_0 : i32, i32
  }
  func.func @transform_6(%arg0: i32, %arg1: i32) -> (i32, i32) {
    %c0_i32 = arith.constant 0 : i32
    %c0_i32_0 = arith.constant 0 : i32
    %c0_i32_1 = arith.constant 0 : i32
    return %c0_i32, %c0_i32_0 : i32, i32
  }
  func.func @transform_7(%arg0: i32, %arg1: i32) -> (i32, i32, i32) {
    %c0_i32 = arith.constant 0 : i32
    %c0_i32_0 = arith.constant 0 : i32
    return %arg0, %c0_i32, %arg1 : i32, i32, i32
  }
}

</mosaic_0001>

<bundles_post_ra>
// kernel: tpu_custom_call.1
= control target key start
LH: loop header
LB: loop body
LE: loop exit
PB: predicated region body
PF: predicated region fallthrough
CT: control target
= control target key end

     0   :  { %12 = vsyncpa [#allocation3], 0  ;;  %s3434_s0 = inlined_call_operand.vmem [shape: f32[2,8,256], index: 0, kind: input, shape index: {}]   ;;  %s3435_s1 = inlined_call_operand.vmem [shape: f32[24,8], index: 1, kind: input, shape index: {}]   ;;  %s3436_s2 = inlined_call_operand.vmem [shape: f32[24,1], index: 2, kind: input, shape index: {}]   ;;  %s3437_s3 = inlined_call_operand.vmem [shape: f32[8,8], index: 3, kind: input, shape index: {}]   ;;  %s3438_s4 = inlined_call_operand.vmem [shape: f32[8,1], index: 4, kind: input, shape index: {}]   ;;  %s3439_s5 = inlined_call_operand.vmem [shape: f32[256,16], index: 5, kind: input, shape index: {}]   ;;  %s3440_s6 = inlined_call_operand.vmem [shape: f32[16,256], index: 6, kind: input, shape index: {}]   ;;  %s3441_s7 = inlined_call_operand.hbm [shape: f32[2,8,256], index: 7, kind: output, shape index: {}]  }
   0x1   :  { %14 = vsyncpa [#allocation3 + $0x1], 0  ;;  %s2528_s24 = smov 0   ;;  %s2530_s25 = smov 0  }
   0x2   :  { %s2532_s26 = smov 0   ;;  %s2534_s27 = smov 0  }
   0x3   :  { %s2536_s28 = smov 0   ;;  %s2538_s29 = smov 0  }
   0x4 LB: > { %s2324_s30 = sadd.s32 4294967295, %s2485_s29   ;;  %s2325_s8 = sadd.s32 4294967294, %s2485_s29   ;;  %s2485_s29 = sphi %s2538_s29, %s20_s29   ;;  %s2481_s28 = sphi %s2536_s28, %s3501_s28   ;;  %s2477_s27 = sphi %s2534_s27, %s3500_s27   ;;  %s2473_s26 = sphi %s2532_s26, %s3499_s26   ;;  %s2469_s25 = sphi %s2530_s25, %s3498_s25   ;;  %s2465_s24 = sphi %s2528_s24, %s3497_s24  }
   0x5   : > { %s32_s9 = sadd.s32 1, %s2481_s28  ;;  %s195_s10 = sadd.s32 1, %s2473_s26 }
   0x6   : > { %p34_p0 = scmp.ge.s32.totalorder %s32_s9, 2  ;;  %p205_p1 = scmp.ne.s32.totalorder %s2473_s26, %s2469_s25 }
   0x7   : > { %p206_p2 = scmp.eq.s32.totalorder %s2324_s30, 1  ;;  %p211_p3 = scmp.ne.s32.totalorder %s2469_s25, %s2465_s24 }
   0x8   : > { %s3503_s9 = smov (%p34_p0, %s32_s9), 0  ;;  %p212_p5 = scmp.eq.s32.totalorder %s2325_s8, 1 }
   0x9   : > { %p2568_p4 = por %p206_p2, %p205_p1  ;;  %s190_s12 = ssub.s32 %s2481_s28, %s3503_s9 }
   0xa   : > { %p2328_p6 = scmp.ge.s32.totalorder %s2485_s29, 1  ;;  %p193_p7 = scmp.eq.s32.totalorder %s190_s12, 0 }
   0xb   : > { %p2575_p8 = por %p212_p5, %p211_p3  ;;  %p261_p9 = scmp.lt.s32.totalorder %s2485_s29, 3 }
   0xc   : > { %s2581_s14 = scalar_select %p193_p7, %s2473_s26, %s195_s10  }
   0xd   : > { %p262_p10 = pnand %p2328_p6, %p261_p9 }
   0xf   : > { %265 = sbr.rel (%p262_p10) target bundleno = 892 (0x37c), region = 48 }
  0x14   : > { %p298_p11 = scmp.lt.s32.totalorder %s2477_s27, 1  ;;  %v310_v0 = vld [vmem:[%s3435_s1] sm:$0xff]  ;;  %vm331_vm0 = vcmask 64512   ;;  %v311_v1 = vld [vmem:[%s3435_s1 + $0x8] sm:$0xff]  ;;  %v2487_v5 = vmov 0   ;;  %v312_v8 = vld [vmem:[%s3435_s1 + $0x10] sm:$0xff] }
  0x15   : > { %v313_v2 = vld [vmem:[%s3436_s2] sm:$0xff]  ;;  %v333_v3 = vsel %vm331_vm0, %v310_v0, 0  ;;  %v336_v4 = vsel %vm331_vm0, %v311_v1, 0  ;;  %2395 = vset.pattern.permute.xlu0 %v2487_v5  ;;  %2397 = vset.pattern.permute.xlu2 %v2487_v5  ;;  %v339_v11 = vsel %vm331_vm0, %v312_v8, 0  ;;  %v315_v35 = vld [vmem:[%s3436_s2 + $0x10] sm:$0xff]  ;;  %vm1599_vm9 = vcmask 130048  }
  0x16   : > { %s299_s21 = scalar_select %p298_p11, %s2477_s27, 1  ;;  %v2596_v6 = vand.u32 4294901760, %v333_v3  ;;  %v2598_v7 = vand.u32 4294901760, %v336_v4  ;;  %318 = vperm.xlu0 %2395, %v313_v2   ;;  %2396 = vset.pattern.permute.xlu1 %v2487_v5  ;;  %v2616_v19 = vand.u32 4294901760, %v339_v11 }
  0x17   : > { %328 = vperm.xlu2 %2397, %v315_v35   ;;  %v819_v35 = vld [vmem:[%s3439_s5 + $0x60] sm:$0xff]  ;;  %s294_s23 = sand.u32 1, %s2469_s25   ;;  %s2338_s10 = sshll.u32 %s2477_s27, 4 }
  0x18   : > { %s2337_s30 = sshll.u32 %s299_s21, 4  ;;  %v2604_v9 = vsub.f32 %v333_v3, %v2596_v6  ;;  %v2607_v10 = vsub.f32 %v336_v4, %v2598_v7  ;;  %v375_v26 = vsub.f32 %v339_v11, %v2616_v19  ;;  %s2243_s16 = scalar_lea.hbm %s3441_s7, %s2338_s10 }
  0x19   : > { %s305_s12 = scalar_lea.vmem %s3434_s0, %s2337_s30  ;;  %s2329_s30 = sshll.u32 %s294_s23, 4 }
  0x1a   : > { %v308_v12 = vld [vmem:[%s305_s12] sm:$0xff]  ;;  %v360_v13 = vand.u32 4294901760, %v2604_v9  ;;  %v309_v14 = vld [vmem:[%s305_s12 + $0x8] sm:$0xff]  ;;  %v368_v18 = vand.u32 4294901760, %v2607_v10  ;;  %v376_v32 = vand.u32 4294901760, %v375_v26  ;;  %s296_s8 = scalar_lea.vmem [#allocation2], %s2329_s30 }
  0x1b   : > { %v356_v15 = vand.u32 4294901760, %v308_v12  ;;  %v564_v16 = vand.u32 4294901760, %v309_v14  ;;  %s2245_s17 = sshll.u32 %s296_s8, 4  ;;  %s2247_s18 = sshll.u32 %s2243_s16, 4  ;;  %s2246_s17 = int_to_ptr.vmem [resolvable:$true] %s2245_s17  ;;  %s2248_s18 = int_to_ptr.hbm [resolvable:$true] %s2247_s18 }
  0x1c   : > { %v361_v17 = vsub.f32 %v2604_v9, %v360_v13  ;;  %v369_v25 = vsub.f32 %v2607_v10, %v368_v18  ;;  %v377_v33 = vsub.f32 %v375_v26, %v376_v32  ;;  %s2230_s19 = scalar_lea.sflag [#allocation3], %s294_s23  ;;  %s2421_s27 = sshra.s32 %s2248_s18, 4  ;;  %s2422_s27 = int_to_ptr.hbm [resolvable:$true] %s2421_s27 }
  0x1d   : > { %357 = vmatpush.msra.mxu0 %v356_v15  ;;  %v399_v20 = vsub.f32 %v308_v12, %v356_v15  ;;  %467 = vmatpush.msra.mxu3 %v356_v15  ;;  %v607_v21 = vsub.f32 %v309_v14, %v564_v16  ;;  %s2423_s20 = scalar_lea.hbm %s2422_s27, 16  ;;  %s2427_s30 = scalar_lea.hbm %s3441_s7, 32 }
  0x1e   : > { %v362_v22 = vand.u32 4294901760, %v361_v17  ;;  %471 = vmatmul.f32.vlgmr.msra.gmra.mxu3 %v360_v13  ;;  %v370_v31 = vand.u32 4294901760, %v369_v25  ;;  %v378_v34 = vand.u32 4294901760, %v377_v33  ;;  %v2675_v17 = vld [vmem:[%s3440_s6] sm:$0xff]  ;;  %p2424_p12 = scmp.ne.s32.totalorder %s2422_s27, %s2423_s20  ;;  %p2428_p1 = scmp.lt.s32.totalorder %s2422_s27, %s3441_s7 }
  0x1f   : > { %434 = vmatpush.msra.mxu2 %v399_v20  ;;  %v400_v23 = vand.u32 4294901760, %v399_v20  ;;  %v608_v24 = vand.u32 4294901760, %v607_v21  ;;  %3470 = vst [vmem:[#allocation7_spill] sm:$0xff] %v2675_v17  ;;  %vm761_vm2 = vcmp.gt.f32.partialorder %v2675_v17, 0.0  ;;  %p2429_p2 = scmp.lt.s32.totalorder %s2427_s30, %s2423_s20 }
  0x20   : > { %363 = vmatmul.f32.vlgmr.msra.gmra.mxu0 %v362_v22  ;;  %437 = vmatmul.f32.vlgmr.msra.gmra.mxu2 %v2604_v9  ;;  %p2425_p13 = pnand %p2424_p12, %p2568_p4 }
  0x21   : > { %v401_v27 = vsub.f32 %v399_v20, %v400_v23  ;;  %565 = vmatpush.msrb.mxu2 %v564_v16  ;;  %505 = vmatpush.msrb.mxu0 %v400_v23  ;;  %v609_v28 = vsub.f32 %v607_v21, %v608_v24  ;;  %p2430_p3 = por %p2429_p2, %p2428_p1 }
  0x22   : > { %p2426_p0 = pneg %p2425_p13 }
  0x23   : > { %713 = vmatpush.msra.mxu2 %v608_v24  ;;  %642 = vmatpush.msra.mxu0 %v607_v21  ;;  %v402_v29 = vand.u32 4294901760, %v401_v27  ;;  %v610_v30 = vand.u32 4294901760, %v609_v28  ;;  %v2680_v21 = vld [vmem:[%s3440_s6 + $0x18] sm:$0xff]  ;;  %v2687_v24 = vld [vmem:[%s3440_s6 + $0x8] sm:$0xff] }
  0x24   : > { %vm764_vm3 = vcmp.gt.f32.partialorder %v2680_v21, 0.0  ;;  %vm762_vm4 = vcmp.gt.f32.partialorder %v2687_v24, 0.0  ;;  %p2431_p5 = pnand %p2430_p3, %p2426_p0 }
  0x25   : > { %403 = vmatpush.msra.mxu1 %v402_v29  ;;  %611 = vmatpush.msrb.mxu3 %v610_v30  ;;  %v822_v29 = vld [vmem:[%s3439_s5 + $0x78] sm:$0xff]  ;;  %v821_v30 = vld [vmem:[%s3439_s5 + $0x70] sm:$0xff] }
  0x26   : > { %405 = vmatmul.f32.vlgmr.msra.gmra.mxu1 %v2596_v6  ;;  %477 = vmatmul.f32.gmra.mxu3 %v368_v18  ;;  %v2705_v33 = vand.u32 4294901760, %v821_v30 }
  0x27   : > { %535 = vmatpush.msrb.mxu1 %v356_v15  ;;  %743 = vmatpush.msra.mxu3 %v564_v16 }
  0x28   : > { %371 = vmatmul.f32.gmra.mxu0 %v370_v31  ;;  %442 = vmatmul.f32.gmra.mxu2 %v2607_v10 }
  0x29   : > { %675 = vmatpush.msra.mxu1 %v564_v16  ;;  %v2670_v16 = vld [vmem:[%s3440_s6 + $0x10] sm:$0xff] }
  0x2a   : > { %vm763_vm1 = vcmp.gt.f32.partialorder %v2670_v16, 0.0 }
  0x2e   : > { %409 = vmatmul.f32.gmra.mxu1 %v2598_v7  ;;  %483 = vmatmul.f32.gmra.mxu3 %v376_v32 }
  0x30   : > { %379 = vmatmul.f32.gmra.mxu0 %v378_v34  ;;  %447 = vmatmul.f32.gmra.mxu2 %v375_v26 }
  0x36   : > { %413 = vmatmul.f32.gmra.mxu1 %v2616_v19  ;;  %613 = vmatmul.f32.vlgmr.msrb.gmra.mxu3 %v2596_v6 }
  0x38   : > { %507 = vmatmul.f32.vlgmr.msrb.gmra.mxu0 %v2596_v6  ;;  %571 = vmatmul.f32.vlgmr.msrb.gmra.mxu2 %v362_v22 }
  0x3e   : > { %537 = vmatmul.f32.vlgmr.msrb.gmra.mxu1 %v2596_v6  ;;  %617 = vmatmul.f32.gmra.mxu3 %v2598_v7 }
  0x40   : > { %511 = vmatmul.f32.gmra.mxu0 %v2598_v7  ;;  %579 = vmatmul.f32.gmra.mxu2 %v370_v31  ;;  %v820_v31 = vld [vmem:[%s3439_s5 + $0x68] sm:$0xff] }
  0x46   : > { %541 = vmatmul.f32.gmra.mxu1 %v2598_v7  ;;  %621 = vmatmul.f32.gmra.mxu3 %v2616_v19 }
  0x48   : > { %515 = vmatmul.f32.gmra.mxu0 %v2616_v19  ;;  %587 = vmatmul.f32.gmra.mxu2 %v378_v34  ;;  %v2707_v34 = vand.u32 4294901760, %v820_v31 }
  0x4e   : > { %545 = vmatmul.f32.gmra.mxu1 %v2616_v19  ;;  %745 = vmatmul.f32.vlgmr.msra.gmra.mxu3 %v2596_v6 }
  0x50   : > { %645 = vmatmul.f32.vlgmr.msra.gmra.mxu0 %v2604_v9  ;;  %715 = vmatmul.f32.vlgmr.msra.gmra.mxu2 %v2596_v6 }
  0x56   : > { %679 = vmatmul.f32.vlgmr.msra.gmra.mxu1 %v360_v13  ;;  %749 = vmatmul.f32.gmra.mxu3 %v2598_v7 }
  0x58   : > { %650 = vmatmul.f32.gmra.mxu0 %v2607_v10  ;;  %719 = vmatmul.f32.gmra.mxu2 %v2598_v7 }
  0x5e   : > { %685 = vmatmul.f32.gmra.mxu1 %v368_v18  ;;  %753 = vmatmul.f32.gmra.mxu3 %v2616_v19 }
  0x60   : > { %655 = vmatmul.f32.gmra.mxu0 %v375_v26  ;;  %723 = vmatmul.f32.gmra.mxu2 %v2616_v19 }
  0x66   : > { %691 = vmatmul.f32.gmra.mxu1 %v376_v32  ;;  %v2703_v32 = vand.u32 4294901760, %v822_v29 }
  0x68   : > { %1053 = vmatpush.msrb.mxu3 %v2703_v32  ;;  %840 = vmatpush.msrb.mxu0 %v2703_v32 }
  0x6a   : > { %1055 = vmatpush.msrb.mxu3 %v2705_v33  ;;  %842 = vmatpush.msrb.mxu0 %v2705_v33 }
  0x6c   : > { %1057 = vmatpush.msrb.mxu3 %v2707_v34  ;;  %844 = vmatpush.msrb.mxu0 %v2707_v34 }
  0x71   : > { %v329_v45 = vpop.permute.xlu2 %328 }
  0x88   : > { %v319_v57 = vpop.permute.xlu0 %318 }
  0x9d   : > { %v364_v36 = vpop.f32.mrf.mxu0 }
  0x9e   : > { %v365_v59 = vadd.f32 %v364_v36, %v319_v57  ;;  %v818_v36 = vld [vmem:[%s3439_s5 + $0x58] sm:$0xff] }
  0xa1   : > { %v472_v37 = vpop.f32.mrf.mxu3 }
  0xa3   : > { %v406_v38 = vpop.f32.mrf.mxu1  ;;  %v438_v39 = vpop.f32.mrf.mxu2 }
  0xa4   : > { %v407_v63 = vadd.f32 %v406_v38, %v365_v59 }
  0xa5   : > { %v2645_v40 = vpop.f32.mrf.mxu0 }
  0xa6   : > { %v439_v2 = vadd.f32 %v438_v39, %v407_v63  ;;  %v2719_v39 = vand.u32 4294901760, %v819_v35 }
  0xa8   : > { %v473_v6 = vadd.f32 %v472_v37, %v439_v2  ;;  %v817_v37 = vld [vmem:[%s3439_s5 + $0x50] sm:$0xff]  ;;  %1059 = vmatpush.msrb.mxu3 %v2719_v39  ;;  %846 = vmatpush.msrb.mxu0 %v2719_v39 }
  0xa9   : > { %v2647_v41 = vpop.f32.mrf.mxu3 }
  0xab   : > { %v2649_v42 = vpop.f32.mrf.mxu1  ;;  %v2651_v43 = vpop.f32.mrf.mxu2 }
  0xad   : > { %v380_v44 = vpop.f32.mrf.mxu0 }
  0xae   : > { %v381_v46 = vadd.f32 %v380_v44, %v329_v45  ;;  %v2721_v44 = vand.u32 4294901760, %v818_v36 }
  0xb0   : > { %1061 = vmatpush.msrb.mxu3 %v2721_v44  ;;  %848 = vmatpush.msrb.mxu0 %v2721_v44 }
  0xb1   : > { %v484_v47 = vpop.f32.mrf.mxu3 }
  0xb3   : > { %v414_v48 = vpop.f32.mrf.mxu1  ;;  %v448_v49 = vpop.f32.mrf.mxu2 }
  0xb4   : > { %v415_v50 = vadd.f32 %v414_v48, %v381_v46  ;;  %v816_v46 = vld [vmem:[%s3439_s5 + $0x48] sm:$0xff]  ;;  %v2732_v48 = vsub.f32 %v821_v30, %v2705_v33 }
  0xb5   : > { %v508_v51 = vpop.f32.mrf.mxu0 }
  0xb6   : > { %v449_v52 = vadd.f32 %v448_v49, %v415_v50  ;;  %v509_v10 = vadd.f32 %v508_v51, %v473_v6  ;;  %v2735_v49 = vsub.f32 %v820_v31, %v2707_v34  ;;  %v2739_v50 = vand.u32 4294901760, %v816_v46 }
  0xb7   : > { %v896_v63 = vand.u32 4294901760, %v2732_v48 }
  0xb8   : > { %v485_v53 = vadd.f32 %v484_v47, %v449_v52  ;;  %v2729_v47 = vsub.f32 %v822_v29, %v2703_v32 }
  0xb9   : > { %v614_v54 = vpop.f32.mrf.mxu3 }
  0xba   : > { %v890_v59 = vand.u32 4294901760, %v2729_v47  ;;  %995 = vmatpush.msrb.mxu2 %v2729_v47 }
  0xbb   : > { %v538_v55 = vpop.f32.mrf.mxu1  ;;  %v572_v56 = vpop.f32.mrf.mxu2 }
  0xbc   : > { %v573_v7 = vadd.f32 %v572_v56, %v319_v57  ;;  %v2665_v13 = vadd.f32 %v538_v55, %v509_v10  ;;  %v815_v55 = vld [vmem:[%s3439_s5 + $0x40] sm:$0xff]  ;;  %998 = vmatpush.msrb.mxu2 %v2732_v48 }
  0xbd   : > { %v2653_v58 = vpop.f32.mrf.mxu0 }
  0xbe   : > { %v615_v14 = vadd.f32 %v614_v54, %v573_v7  ;;  %v765_v22 = vperm.slane %v2665_v13, 0  ;;  %v2749_v54 = vsub.f32 %v818_v36, %v2721_v44  ;;  %v2774_v7 = vand.u32 4294901760, %v815_v55  ;;  %1001 = vmatpush.msrb.mxu2 %v2735_v49 }
  0xc0   : > { %v769_v27 = vsel %vm763_vm1, %v765_v22, -inf  ;;  %v767_v28 = vsel %vm761_vm2, %v765_v22, -inf  ;;  %v812_v22 = vld [vmem:[%s3439_s5 + $0x28] sm:$0xff] }
  0xc1   : > { %v2655_v60 = vpop.f32.mrf.mxu3  ;;  %v2820_v36 = vand.u32 4294901760, %v812_v22 }
  0xc3   : > { %v2657_v61 = vpop.f32.mrf.mxu1  ;;  %v2659_v62 = vpop.f32.mrf.mxu2 }
  0xc5   : > { %v516_v0 = vpop.f32.mrf.mxu0 }
  0xc6   : > { %v517_v1 = vadd.f32 %v516_v0, %v485_v53  ;;  %v2746_v53 = vsub.f32 %v819_v35, %v2719_v39  ;;  %v814_v0 = vld [vmem:[%s3439_s5 + $0x38] sm:$0xff] }
  0xc8   : > { %v908_v2 = vand.u32 4294901760, %v2746_v53  ;;  %1004 = vmatpush.msrb.mxu2 %v2746_v53 }
  0xc9   : > { %v622_v3 = vpop.f32.mrf.mxu3 }
  0xca   : > { %v909_v10 = vsub.f32 %v2746_v53, %v908_v2  ;;  %1007 = vmatpush.msrb.mxu2 %v2749_v54  ;;  %v834_v53 = vld [vmem:[%s3439_s5 + $0xd8] sm:$0xff] }
  0xcb   : > { %v546_v4 = vpop.f32.mrf.mxu1  ;;  %v588_v5 = vpop.f32.mrf.mxu2 }
  0xcc   : > { %v2661_v8 = vadd.f32 %v546_v4, %v517_v1  ;;  %v589_v9 = vadd.f32 %v588_v5, %v329_v45  ;;  %v2723_v45 = vand.u32 4294901760, %v817_v37  ;;  %v902_v1 = vand.u32 4294901760, %v2735_v49 }
  0xcd   : > { %v646_v12 = vpop.f32.mrf.mxu0  ;;  %v891_v4 = vsub.f32 %v2729_v47, %v890_v59  ;;  %v897_v5 = vsub.f32 %v2732_v48, %v896_v63 }
  0xce   : > { %3468 = vst [vmem:[#allocation5_spill] sm:$0xff] %v2661_v8  ;;  %v2663_v11 = vadd.f32 %v622_v3, %v589_v9  ;;  %v647_v15 = vadd.f32 %v646_v12, %v615_v14  ;;  %v914_v3 = vand.u32 4294901760, %v2749_v54  ;;  %v2772_v6 = vsub.f32 %v817_v37, %v2723_v45  ;;  %v813_v14 = vld [vmem:[%s3439_s5 + $0x30] sm:$0xff]  ;;  %v810_v37 = vld [vmem:[%s3439_s5 + $0x18] sm:$0xff]  ;;  %1063 = vmatpush.msrb.mxu3 %v2723_v45 }
  0xcf   : > { %v903_v9 = vsub.f32 %v2735_v49, %v902_v1  ;;  %v2784_v12 = vand.u32 4294901760, %v814_v0  ;;  %v2813_v31 = vand.u32 4294901760, %v813_v14  ;;  %850 = vmatpush.msrb.mxu0 %v2723_v45 }
  0xd0   : > { %3469 = vst [vmem:[#allocation6_spill] sm:$0xff] %v2663_v11  ;;  %1010 = vmatpush.msrb.mxu2 %v2772_v6  ;;  %1065 = vmatpush.msrb.mxu3 %v2739_v50 }
  0xd1   : > { %v746_v23 = vpop.f32.mrf.mxu3  ;;  %v2811_v30 = vsub.f32 %v814_v0, %v2784_v12  ;;  %852 = vmatpush.msrb.mxu0 %v2739_v50 }
  0xd2   : > { %1067 = vmatpush.msrb.mxu3 %v2774_v7 }
  0xd3   : > { %v680_v18 = vpop.f32.mrf.mxu1  ;;  %v716_v19 = vpop.f32.mrf.mxu2  ;;  %v3448_v0 = vand.u32 4294901760, %v2811_v30  ;;  %854 = vmatpush.msrb.mxu0 %v2774_v7 }
  0xd4   : > { %v681_v20 = vadd.f32 %v680_v18, %v647_v15  ;;  %v892_v15 = vand.u32 4294901760, %v891_v4  ;;  %v898_v18 = vand.u32 4294901760, %v897_v5  ;;  %v2843_v4 = vsub.f32 %v812_v22, %v2820_v36  ;;  %1069 = vmatpush.msrb.mxu3 %v2784_v12 }
  0xd5   : > { %v2845_v5 = vand.u32 4294901760, %v810_v37  ;;  %856 = vmatpush.msrb.mxu0 %v2784_v12 }
  0xd6   : > { %v717_v25 = vadd.f32 %v716_v19, %v681_v20  ;;  %v920_v19 = vand.u32 4294901760, %v2772_v6  ;;  %v2792_v20 = vsub.f32 %v816_v46, %v2739_v50  ;;  %893 = vmatpush.msrb.mxu1 %v892_v15  ;;  %1071 = vmatpush.msrb.mxu3 %v2813_v31 }
  0xd7   : > { %858 = vmatpush.msrb.mxu0 %v2813_v31 }
  0xd8   : > { %v2691_v26 = vadd.f32 %v746_v23, %v717_v25  ;;  %v915_v23 = vsub.f32 %v2749_v54, %v914_v3  ;;  %v2803_v25 = vsub.f32 %v815_v55, %v2774_v7  ;;  %v926_v29 = vand.u32 4294901760, %v2792_v20  ;;  %899 = vmatpush.msrb.mxu1 %v898_v18  ;;  %1013 = vmatpush.msrb.mxu2 %v2792_v20  ;;  %v833_v54 = vld [vmem:[%s3439_s5 + $0xd0] sm:$0xff] }
  0xd9   : > { %v921_v35 = vsub.f32 %v2772_v6, %v920_v19  ;;  %1073 = vmatpush.msrb.mxu3 %v2820_v36  ;;  %860 = vmatpush.msrb.mxu0 %v2820_v36  ;;  %v832_v6 = vld [vmem:[%s3439_s5 + $0xc8] sm:$0xff] }
  0xda   : > { %v766_v38 = vperm.slane %v2691_v26, 0  ;;  %v932_v46 = vand.u32 4294901760, %v2803_v25  ;;  %v916_v55 = vand.u32 4294901760, %v915_v23  ;;  %v939_v23 = vsub.f32 %v2811_v30, %v3448_v0  ;;  %1016 = vmatpush.msrb.mxu2 %v2803_v25 }
  0xdc   : > { %v770_v51 = vsel %vm764_vm3, %v766_v38, -inf  ;;  %v768_v52 = vsel %vm762_vm4, %v766_v38, -inf  ;;  %v910_v38 = vand.u32 4294901760, %v909_v10  ;;  %v933_v10 = vsub.f32 %v2803_v25, %v932_v46  ;;  %1019 = vmatpush.msrb.mxu2 %v2811_v30  ;;  %v830_v25 = vld [vmem:[%s3439_s5 + $0xb8] sm:$0xff] }
  0xdd   : > { %v774_v56 = vmax.f32 %v769_v27, %v770_v51  ;;  %v771_v57 = vmax.f32 %v767_v28, %v768_v52  ;;  %v811_v27 = vld [vmem:[%s3439_s5 + $0x20] sm:$0xff]  ;;  %v904_v28 = vand.u32 4294901760, %v903_v9  ;;  %v2828_v51 = vsub.f32 %v813_v14, %v2813_v31 }
  0xde   : > { %v2830_v52 = vand.u32 4294901760, %v811_v27  ;;  %v922_v9 = vand.u32 4294901760, %v921_v35  ;;  %v2867_v35 = vsub.f32 %v810_v37, %v2845_v5  ;;  %v940_v37 = vand.u32 4294901760, %v939_v23 }
  0xdf   : > { %775 = vmax.xlane.f32.xlu1 %v774_v56  ;;  %772 = vmax.xlane.f32.xlu0 %v771_v57  ;;  %v809_v56 = vld [vmem:[%s3439_s5 + $0x10] sm:$0xff]  ;;  %v927_v57 = vsub.f32 %v2792_v20, %v926_v29  ;;  %v3442_v14 = vand.u32 4294901760, %v2828_v51  ;;  %v831_v20 = vld [vmem:[%s3439_s5 + $0xc0] sm:$0xff] }
  0xe0   : > { %905 = vmatpush.msrb.mxu1 %v904_v28  ;;  %v2855_v15 = vsub.f32 %v811_v27, %v2830_v52  ;;  %v2857_v18 = vand.u32 4294901760, %v809_v56  ;;  %v3443_v28 = vand.u32 4294901760, %v2843_v4  ;;  %v934_v27 = vand.u32 4294901760, %v933_v10  ;;  %1022 = vmatpush.msrb.mxu2 %v2828_v51 }
  0xe1   : > { %v928_v22 = vand.u32 4294901760, %v927_v57  ;;  %v3445_v10 = vand.u32 4294901760, %v2867_v35  ;;  %1075 = vmatpush.msrb.mxu3 %v2830_v52  ;;  %862 = vmatpush.msrb.mxu0 %v2830_v52 }
  0xe2   : > { %911 = vmatpush.msrb.mxu1 %v910_v38  ;;  %v945_v38 = vsub.f32 %v2828_v51, %v3442_v14  ;;  %v2877_v57 = vsub.f32 %v809_v56, %v2857_v18  ;;  %1025 = vmatpush.msrb.mxu2 %v2843_v4 }
  0xe3   : > { %1077 = vmatpush.msrb.mxu3 %v2845_v5  ;;  %864 = vmatpush.msrb.mxu0 %v2845_v5 }
  0xe4   : > { %917 = vmatpush.msrb.mxu1 %v916_v55  ;;  %v3446_v55 = vand.u32 4294901760, %v2855_v15  ;;  %v946_v56 = vand.u32 4294901760, %v945_v38  ;;  %1028 = vmatpush.msrb.mxu2 %v2855_v15 }
  0xe5   : > { %1079 = vmatpush.msrb.mxu3 %v2857_v18  ;;  %866 = vmatpush.msrb.mxu0 %v2857_v18 }
  0xe6   : > { %923 = vmatpush.msrb.mxu1 %v922_v9  ;;  %v951_v9 = vsub.f32 %v2843_v4, %v3443_v28  ;;  %v957_v14 = vsub.f32 %v2855_v15, %v3446_v55  ;;  %v963_v28 = vsub.f32 %v2867_v35, %v3445_v10  ;;  %1031 = vmatpush.msrb.mxu2 %v2867_v35 }
  0xe8   : > { %929 = vmatpush.msrb.mxu1 %v928_v22  ;;  %v3444_v22 = vand.u32 4294901760, %v2877_v57  ;;  %v952_v23 = vand.u32 4294901760, %v951_v9  ;;  %v958_v38 = vand.u32 4294901760, %v957_v14  ;;  %v964_v9 = vand.u32 4294901760, %v963_v28  ;;  %1034 = vmatpush.msrb.mxu2 %v2877_v57  ;;  %v808_v14 = vld [vmem:[%s3439_s5 + $0x8] sm:$0xff] }
  0xea   : > { %935 = vmatpush.msrb.mxu1 %v934_v27  ;;  %v314_v27 = vld [vmem:[%s3436_s2 + $0x8] sm:$0xff] }
  0xec   : > { %941 = vmatpush.msrb.mxu1 %v940_v37  ;;  %v969_v37 = vsub.f32 %v2877_v57, %v3444_v22  ;;  %v2915_v22 = vand.u32 4294901760, %v808_v14 }
  0xee   : > { %947 = vmatpush.msrb.mxu1 %v946_v56  ;;  %v970_v56 = vand.u32 4294901760, %v969_v37  ;;  %v2921_v28 = vsub.f32 %v808_v14, %v2915_v22  ;;  %1081 = vmatpush.msrb.mxu3 %v2915_v22  ;;  %v838_v14 = vld [vmem:[%s3439_s5 + $0xf8] sm:$0xff] }
  0xef   : > { %868 = vmatpush.msrb.mxu0 %v2915_v22 }
  0xf0   : > { %953 = vmatpush.msrb.mxu1 %v952_v23  ;;  %v807_v23 = vld [vmem:[%s3439_s5] sm:$0xff]  ;;  %1037 = vmatpush.msrb.mxu2 %v2921_v28 }
  0xf2   : > { %959 = vmatpush.msrb.mxu1 %v958_v38  ;;  %v3447_v38 = vand.u32 4294901760, %v2921_v28 }
  0xf4   : > { %965 = vmatpush.msrb.mxu1 %v964_v9  ;;  %v975_v9 = vsub.f32 %v2921_v28, %v3447_v38  ;;  %v837_v38 = vld [vmem:[%s3439_s5 + $0xf0] sm:$0xff] }
  0xf5   : > { %v2958_v47 = vand.u32 4294901760, %v837_v38 }
  0xf6   : > { %971 = vmatpush.msrb.mxu1 %v970_v56  ;;  %v976_v10 = vand.u32 4294901760, %v975_v9  ;;  %v836_v9 = vld [vmem:[%s3439_s5 + $0xe8] sm:$0xff] }
  0xf8   : > { %323 = vperm.xlu1 %2396, %v314_v27   ;;  %v2923_v27 = vand.u32 4294901760, %v807_v23  ;;  %977 = vmatpush.msrb.mxu1 %v976_v10 }
  0xfa   : > { %v2929_v37 = vsub.f32 %v807_v23, %v2923_v27  ;;  %1083 = vmatpush.msrb.mxu3 %v2923_v27  ;;  %870 = vmatpush.msrb.mxu0 %v2923_v27  ;;  %v2944_v23 = vand.u32 4294901760, %v838_v14 }
  0xfc   : > { %v980_v56 = vand.u32 4294901760, %v2929_v37  ;;  %1040 = vmatpush.msrb.mxu2 %v2929_v37  ;;  %1100 = vmatpush.msra.mxu0 %v890_v59  ;;  %v2956_v0 = vsub.f32 %v838_v14, %v2944_v23  ;;  %v2970_v14 = vsub.f32 %v837_v38, %v2958_v47 }
  0xfe   : > { %v981_v55 = vsub.f32 %v2929_v37, %v980_v56  ;;  %1104 = vmatpush.msra.mxu0 %v896_v63  ;;  %1212 = vmatpush.msra.mxu2 %v2944_v23  ;;  %v3449_v48 = vand.u32 4294901760, %v2956_v0  ;;  %v2967_v63 = vand.u32 4294901760, %v836_v9 }
 0x100   : > { %v982_v59 = vand.u32 4294901760, %v981_v55  ;;  %1108 = vmatpush.msra.mxu0 %v902_v1  ;;  %1214 = vmatpush.msra.mxu2 %v2958_v47  ;;  %v835_v55 = vld [vmem:[%s3439_s5 + $0xe0] sm:$0xff]  ;;  %v1263_v49 = vsub.f32 %v2956_v0, %v3449_v48  ;;  %v3450_v1 = vand.u32 4294901760, %v2970_v14  ;;  %v2986_v38 = vsub.f32 %v836_v9, %v2967_v63 }
 0x101   : > { %v2983_v10 = vand.u32 4294901760, %v835_v55  ;;  %v2999_v9 = vand.u32 4294901760, %v834_v53 }
 0x102   : > { %983 = vmatpush.msrb.mxu1 %v982_v59  ;;  %1112 = vmatpush.msra.mxu0 %v908_v2  ;;  %v1269_v2 = vsub.f32 %v2970_v14, %v3450_v1  ;;  %v3457_v59 = vand.u32 4294901760, %v2986_v38 }
 0x103   : > { %1216 = vmatpush.msra.mxu2 %v2967_v63  ;;  %v3002_v48 = vsub.f32 %v835_v55, %v2983_v10  ;;  %v3016_v55 = vsub.f32 %v834_v53, %v2999_v9 }
 0x104   : > { %1171 = vmatpush.msra.mxu1 %v2703_v32  ;;  %1116 = vmatpush.msra.mxu0 %v914_v3  ;;  %v1264_v32 = vand.u32 4294901760, %v1263_v49  ;;  %v1275_v3 = vsub.f32 %v2986_v38, %v3457_v59  ;;  %v3013_v49 = vand.u32 4294901760, %v833_v54 }
 0x105   : > { %1218 = vmatpush.msra.mxu2 %v2983_v10  ;;  %v3454_v1 = vand.u32 4294901760, %v3002_v48 }
 0x106   : > { %1173 = vmatpush.msra.mxu1 %v2705_v33  ;;  %1120 = vmatpush.msra.mxu0 %v920_v19  ;;  %v1270_v33 = vand.u32 4294901760, %v1269_v2  ;;  %v3451_v19 = vand.u32 4294901760, %v3016_v55  ;;  %v3030_v53 = vsub.f32 %v833_v54, %v3013_v49  ;;  %v3046_v54 = vand.u32 4294901760, %v831_v20 }
 0x107   : > { %1265 = vmatpush.msra.mxu3 %v1264_v32  ;;  %1220 = vmatpush.msra.mxu2 %v2999_v9  ;;  %v3027_v32 = vand.u32 4294901760, %v832_v6  ;;  %v1281_v2 = vsub.f32 %v3002_v48, %v3454_v1 }
 0x108   : > { %1175 = vmatpush.msra.mxu1 %v2707_v34  ;;  %1124 = vmatpush.msra.mxu0 %v926_v29  ;;  %v1276_v34 = vand.u32 4294901760, %v1275_v3  ;;  %v3452_v29 = vand.u32 4294901760, %v3030_v53 }
 0x109   : > { %1271 = vmatpush.msra.mxu3 %v1270_v33  ;;  %1222 = vmatpush.msra.mxu2 %v3013_v49  ;;  %v3049_v33 = vsub.f32 %v832_v6, %v3027_v32  ;;  %v1282_v3 = vand.u32 4294901760, %v1281_v2  ;;  %v3066_v2 = vsub.f32 %v831_v20, %v3046_v54 }
 0x10a   : > { %1177 = vmatpush.msra.mxu1 %v2719_v39  ;;  %1128 = vmatpush.msra.mxu0 %v932_v46  ;;  %v1287_v39 = vsub.f32 %v3016_v55, %v3451_v19  ;;  %v3062_v19 = vand.u32 4294901760, %v830_v25 }
 0x10b   : > { %1277 = vmatpush.msra.mxu3 %v1276_v34  ;;  %1224 = vmatpush.msra.mxu2 %v3027_v32  ;;  %v1293_v34 = vsub.f32 %v3030_v53, %v3452_v29  ;;  %v3453_v6 = vand.u32 4294901760, %v3049_v33  ;;  %v3472_v29 = vand.u32 4294901760, %v2828_v51  ;;  %v3456_v20 = vand.u32 4294901760, %v3066_v2 }
 0x10c   : > { %1179 = vmatpush.msra.mxu1 %v2721_v44  ;;  %v3471_v44 = vand.u32 4294901760, %v2811_v30  ;;  %v1288_v46 = vand.u32 4294901760, %v1287_v39  ;;  %v829_v30 = vld [vmem:[%s3439_s5 + $0xb0] sm:$0xff]  ;;  %v3473_v51 = vand.u32 4294901760, %v2843_v4 }
 0x10d   : > { %1283 = vmatpush.msra.mxu3 %v1282_v3  ;;  %1226 = vmatpush.msra.mxu2 %v3046_v54  ;;  %v1299_v39 = vsub.f32 %v3049_v33, %v3453_v6  ;;  %v3078_v3 = vsub.f32 %v830_v25, %v3062_v19 }
 0x10e   : > { %1132 = vmatpush.msra.mxu0 %v3471_v44  ;;  %1181 = vmatpush.msra.mxu1 %v2723_v45  ;;  %v1294_v45 = vand.u32 4294901760, %v1293_v34  ;;  %v3075_v44 = vand.u32 4294901760, %v829_v30 }
 0x10f   : > { %1289 = vmatpush.msra.mxu3 %v1288_v46  ;;  %1228 = vmatpush.msra.mxu2 %v3062_v19  ;;  %v1300_v34 = vand.u32 4294901760, %v1299_v39  ;;  %v3455_v6 = vand.u32 4294901760, %v3078_v3  ;;  %v3474_v39 = vand.u32 4294901760, %v2855_v15  ;;  %v3475_v15 = vand.u32 4294901760, %v2867_v35 }
 0x110   : > { %1183 = vmatpush.msra.mxu1 %v2739_v50  ;;  %1136 = vmatpush.msra.mxu0 %v3472_v29  ;;  %v828_v50 = vld [vmem:[%s3439_s5 + $0xa8] sm:$0xff]  ;;  %v3092_v25 = vsub.f32 %v829_v30, %v3075_v44  ;;  %v1305_v29 = vsub.f32 %v3066_v2, %v3456_v20 }
 0x111   : > { %v3089_v1 = vand.u32 4294901760, %v828_v50  ;;  %1295 = vmatpush.msra.mxu3 %v1294_v45  ;;  %1230 = vmatpush.msra.mxu2 %v3075_v44  ;;  %v1311_v46 = vsub.f32 %v3078_v3, %v3455_v6 }
 0x112   : > { %1185 = vmatpush.msra.mxu1 %v2774_v7  ;;  %1140 = vmatpush.msra.mxu0 %v3473_v51  ;;  %v827_v7 = vld [vmem:[%s3439_s5 + $0xa0] sm:$0xff]  ;;  %v3461_v4 = vand.u32 4294901760, %v3092_v25  ;;  %v1306_v51 = vand.u32 4294901760, %v1305_v29 }
 0x113   : > { %v3108_v30 = vand.u32 4294901760, %v827_v7  ;;  %v3111_v45 = vsub.f32 %v828_v50, %v3089_v1  ;;  %1301 = vmatpush.msra.mxu3 %v1300_v34  ;;  %1232 = vmatpush.msra.mxu2 %v3089_v1  ;;  %v1312_v6 = vand.u32 4294901760, %v1311_v46 }
 0x114   : > { %1187 = vmatpush.msra.mxu1 %v2784_v12  ;;  %1144 = vmatpush.msra.mxu0 %v3474_v39  ;;  %v826_v12 = vld [vmem:[%s3439_s5 + $0x98] sm:$0xff]  ;;  %v1317_v20 = vsub.f32 %v3092_v25, %v3461_v4 }
 0x115   : > { %v3458_v50 = vand.u32 4294901760, %v3111_v45  ;;  %v3124_v59 = vand.u32 4294901760, %v826_v12  ;;  %1307 = vmatpush.msra.mxu3 %v1306_v51  ;;  %1234 = vmatpush.msra.mxu2 %v3108_v30  ;;  %v3130_v34 = vsub.f32 %v827_v7, %v3108_v30  ;;  %v3476_v51 = vand.u32 4294901760, %v2877_v57 }
 0x116   : > { %1189 = vmatpush.msra.mxu1 %v2813_v31  ;;  %1148 = vmatpush.msra.mxu0 %v3475_v15  ;;  %v825_v31 = vld [vmem:[%s3439_s5 + $0x90] sm:$0xff]  ;;  %v1318_v29 = vand.u32 4294901760, %v1317_v20  ;;  %v3477_v57 = vand.u32 4294901760, %v2921_v28 }
 0x117   : > { %v1323_v46 = vsub.f32 %v3111_v45, %v3458_v50  ;;  %v3139_v39 = vand.u32 4294901760, %v825_v31  ;;  %v3142_v35 = vsub.f32 %v826_v12, %v3124_v59  ;;  %1313 = vmatpush.msra.mxu3 %v1312_v6  ;;  %1236 = vmatpush.msra.mxu2 %v3124_v59  ;;  %v3460_v7 = vand.u32 4294901760, %v3130_v34 }
 0x118   : > { %1191 = vmatpush.msra.mxu1 %v2820_v36  ;;  %1152 = vmatpush.msra.mxu0 %v3476_v51  ;;  %v824_v36 = vld [vmem:[%s3439_s5 + $0x88] sm:$0xff] }
 0x119   : > { %v1324_v20 = vand.u32 4294901760, %v1323_v46  ;;  %v3459_v15 = vand.u32 4294901760, %v3142_v35  ;;  %v3153_v50 = vand.u32 4294901760, %v824_v36  ;;  %v3156_v12 = vsub.f32 %v825_v31, %v3139_v39  ;;  %1319 = vmatpush.msra.mxu3 %v1318_v29  ;;  %1238 = vmatpush.msra.mxu2 %v3139_v39 }
 0x11a   : > { %1193 = vmatpush.msra.mxu1 %v2830_v52  ;;  %1156 = vmatpush.msra.mxu0 %v3477_v57  ;;  %v1329_v6 = vsub.f32 %v3130_v34, %v3460_v7  ;;  %v823_v52 = vld [vmem:[%s3439_s5 + $0x80] sm:$0xff] }
 0x11b   : > { %v1335_v31 = vsub.f32 %v3142_v35, %v3459_v15  ;;  %v3462_v28 = vand.u32 4294901760, %v3156_v12  ;;  %v3172_v46 = vand.u32 4294901760, %v823_v52  ;;  %v3175_v29 = vsub.f32 %v824_v36, %v3153_v50  ;;  %1325 = vmatpush.msra.mxu3 %v1324_v20  ;;  %1240 = vmatpush.msra.mxu2 %v3153_v50 }
 0x11c   : > { %1195 = vmatpush.msra.mxu1 %v2845_v5  ;;  %1160 = vmatpush.msra.mxu0 %v980_v56  ;;  %v1330_v51 = vand.u32 4294901760, %v1329_v6 }
 0x11d   : > { %v1336_v5 = vand.u32 4294901760, %v1335_v31  ;;  %v1341_v57 = vsub.f32 %v3156_v12, %v3462_v28  ;;  %v3463_v15 = vand.u32 4294901760, %v3175_v29  ;;  %v3186_v7 = vsub.f32 %v823_v52, %v3172_v46  ;;  %1242 = vmatpush.msra.mxu2 %v3172_v46 }
 0x11e   : > { %1197 = vmatpush.msra.mxu1 %v2857_v18  ;;  %1331 = vmatpush.msra.mxu3 %v1330_v51 }
 0x11f   : > { %v1342_v6 = vand.u32 4294901760, %v1341_v57  ;;  %v1347_v52 = vsub.f32 %v3175_v29, %v3463_v15  ;;  %v3464_v31 = vand.u32 4294901760, %v3186_v7 }
 0x120   : > { %1199 = vmatpush.msra.mxu1 %v2915_v22  ;;  %1337 = vmatpush.msra.mxu3 %v1336_v5 }
 0x122   : > { %1201 = vmatpush.msra.mxu1 %v2923_v27  ;;  %1343 = vmatpush.msra.mxu3 %v1342_v6 }
 0x152   : > { %v776_v36 = vpop.xlane.xlu1 %775  ;;  %v773_v4 = vpop.xlane.xlu0 %772 }
 0x153   : > { %v779_v37 = vmul.f32 %v776_v36, %v2670_v16  ;;  %v780_v56 = vmul.f32 %v776_v36, %v2680_v21  ;;  %v777_v18 = vmul.f32 %v773_v4, %v2675_v17  ;;  %v778_v20 = vmul.f32 %v773_v4, %v2687_v24 }
 0x154   : > { %v1348_v21 = vand.u32 4294901760, %v1347_v52  ;;  %v1353_v24 = vsub.f32 %v3186_v7, %v3464_v31 }
 0x155   : > { %v781_v51 = vadd.f32 %v779_v37, %v777_v18  ;;  %v788_v28 = vadd.f32 %v780_v56, %v778_v20 }
 0x156   : > { %1349 = vmatpush.msra.mxu3 %v1348_v21  ;;  %v1354_v5 = vand.u32 4294901760, %v1353_v24 }
 0x157   : > { %v782_v4 = vrot.slane %v781_v51, 4  ;;  %v789_v22 = vrot.slane %v788_v28, 4 }
 0x158   : > { %1355 = vmatpush.msra.mxu3 %v1354_v5 }
 0x159   : > { %v783_v57 = vadd.f32 %v782_v4, %v781_v51  ;;  %v790_v36 = vadd.f32 %v789_v22, %v788_v28  ;;  %v651_v4 = vpop.f32.mrf.mxu0 }
 0x15b   : > { %v784_v15 = vrot.slane %v783_v57, 2  ;;  %v791_v8 = vrot.slane %v790_v36, 2 }
 0x15d   : > { %v785_v11 = vadd.f32 %v784_v15, %v783_v57  ;;  %v792_v37 = vadd.f32 %v791_v8, %v790_v36 }
 0x15f   : > { %v786_v56 = vrot.slane %v785_v11, 1  ;;  %v793_v18 = vrot.slane %v792_v37, 1 }
 0x161   : > { %v787_v27 = vadd.f32 %v786_v56, %v785_v11  ;;  %v794_v20 = vadd.f32 %v793_v18, %v792_v37  ;;  %v686_v37 = vpop.f32.mrf.mxu1 }
 0x163   : > { %v795_v6 = vsub.f32 %v2665_v13, %v787_v27  ;;  %v796_v52 = vsub.f32 %v2691_v26, %v794_v20 }
 0x165   : > { %v797_v31 = vmul.f32 1.442695, %v795_v6  ;;  %v799_v17 = vmul.f32 1.442695, %v796_v52 }
 0x167   : > { %2398 = vpow2.f32 %v797_v31 }
 0x168   : > { %2400 = vpow2.f32 %v799_v17 }
 0x16a   : > { %v324_v21 = vpop.permute.xlu1 %323 }
 0x16b   : > { %v373_v28 = vadd.f32 %v2645_v40, %v324_v21  ;;  %v581_v51 = vadd.f32 %v2659_v62, %v324_v21 }
 0x16d   : > { %v2399_v24 = vpop.eup %2398  ;;  %v411_v8 = vadd.f32 %v2649_v42, %v373_v28  ;;  %v619_v15 = vadd.f32 %v2655_v60, %v581_v51  ;;  %v720_v60 = vpop.f32.mrf.mxu2  ;;  %v3480_v51 = vand.u32 4294901760, %v2986_v38 }
 0x16e   : > { %v2401_v11 = vpop.eup %2400  ;;  %v801_v22 = vperm.slane %v2399_v24, 0 }
 0x16f   : > { %v802_v5 = vperm.slane %v2401_v11, 0  ;;  %v444_v57 = vadd.f32 %v2651_v43, %v411_v8  ;;  %v652_v36 = vadd.f32 %v651_v4, %v619_v15  ;;  %v3481_v11 = vand.u32 4294901760, %v3002_v48 }
 0x170   : > { %v803_v17 = vmul.f32 %v801_v22, %v2665_v13 }
 0x171   : > { %v479_v31 = vadd.f32 %v2647_v41, %v444_v57  ;;  %v687_v40 = vadd.f32 %v686_v37, %v652_v36  ;;  %v804_v42 = vmul.f32 %v802_v5, %v2691_v26  ;;  %v3478_v41 = vand.u32 4294901760, %v2956_v0  ;;  %v750_v26 = vpop.f32.mrf.mxu3 }
 0x172   : > { %v3211_v56 = vand.u32 4294901760, %v803_v17 }
 0x173   : > { %v513_v62 = vadd.f32 %v2653_v58, %v479_v31  ;;  %v721_v27 = vadd.f32 %v720_v60, %v687_v40  ;;  %v3222_v20 = vand.u32 4294901760, %v804_v42 }
 0x174   : > { %985 = vmatmul.f32.vlgmr.msrb.gmra.mxu1 %v3211_v56  ;;  %v872_v18 = vsub.f32 %v803_v17, %v3211_v56 }
 0x175   : > { %v543_v43 = vadd.f32 %v2657_v61, %v513_v62  ;;  %1425 = vmatpush.msrb.mxu1 %v2944_v23  ;;  %v3479_v61 = vand.u32 4294901760, %v2970_v14  ;;  %v751_v21 = vadd.f32 %v750_v26, %v721_v27  ;;  %v3235_v8 = vsub.f32 %v804_v42, %v3222_v20 }
 0x176   : > { %1043 = vmatmul.f32.vlgmr.msrb.gmra.mxu2 %v872_v18  ;;  %v873_v13 = vand.u32 4294901760, %v872_v18 }
 0x177   : > { %1427 = vmatpush.msrb.mxu1 %v2958_v47  ;;  %1472 = vmatpush.msrb.mxu2 %v3478_v41  ;;  %v805_v58 = vmul.f32 %v801_v22, %v543_v43  ;;  %v1245_v22 = vand.u32 4294901760, %v3235_v8 }
 0x178   : > { %1087 = vmatmul.f32.vlgmr.msrb.gmra.mxu3 %v873_v13  ;;  %v874_v6 = vsub.f32 %v872_v18, %v873_v13 }
 0x179   : > { %1429 = vmatpush.msrb.mxu1 %v2967_v63  ;;  %1476 = vmatpush.msrb.mxu2 %v3479_v61  ;;  %v3227_v52 = vand.u32 4294901760, %v805_v58 }
 0x17a   : > { %1543 = vmatpush.msrb.mxu3 %v2944_v23  ;;  %v875_v28 = vand.u32 4294901760, %v874_v6  ;;  %v806_v23 = vmul.f32 %v802_v5, %v751_v21 }
 0x17b   : > { %1431 = vmatpush.msrb.mxu1 %v2983_v10  ;;  %1480 = vmatpush.msrb.mxu2 %v3480_v51  ;;  %v880_v24 = vsub.f32 %v805_v58, %v3227_v52 }
 0x17c   : > { %1545 = vmatpush.msrb.mxu3 %v2958_v47  ;;  %876 = vmatmul.f32.vlgmr.msrb.gmra.mxu0 %v875_v28  ;;  %v3482_v47 = vand.u32 4294901760, %v3016_v55 }
 0x17d   : > { %989 = vmatmul.f32.gmra.mxu1 %v3227_v52  ;;  %1367 = vmatpush.msrb.mxu0 %v2956_v0  ;;  %v881_v15 = vand.u32 4294901760, %v880_v24  ;;  %v3250_v0 = vand.u32 4294901760, %v806_v23 }
 0x17e   : > { %1433 = vmatpush.msrb.mxu1 %v2999_v9  ;;  %1484 = vmatpush.msrb.mxu2 %v3481_v11 }
 0x17f   : > { %1547 = vmatpush.msrb.mxu3 %v2967_v63  ;;  %1048 = vmatmul.f32.gmra.mxu2 %v880_v24  ;;  %v882_v4 = vsub.f32 %v880_v24, %v881_v15  ;;  %v3483_v63 = vand.u32 4294901760, %v3030_v53 }
 0x180   : > { %1370 = vmatpush.msrb.mxu0 %v2970_v14  ;;  %1435 = vmatpush.msrb.mxu1 %v3013_v49  ;;  %v1246_v14 = vsub.f32 %v3235_v8, %v1245_v22 }
 0x181   : > { %1488 = vmatpush.msrb.mxu2 %v3482_v47  ;;  %1549 = vmatpush.msrb.mxu3 %v2983_v10  ;;  %v883_v5 = vand.u32 4294901760, %v882_v4  ;;  %v3484_v10 = vand.u32 4294901760, %v3049_v33 }
 0x182   : > { %1093 = vmatmul.f32.gmra.mxu3 %v881_v15  ;;  %1373 = vmatpush.msrb.mxu0 %v2986_v38  ;;  %v3265_v38 = vsub.f32 %v806_v23, %v3250_v0  ;;  %v1247_v57 = vand.u32 4294901760, %v1246_v14 }
 0x183   : > { %1437 = vmatpush.msrb.mxu1 %v3027_v32  ;;  %1492 = vmatpush.msrb.mxu2 %v3483_v63 }
 0x184   : > { %1551 = vmatpush.msrb.mxu3 %v2999_v9  ;;  %1376 = vmatpush.msrb.mxu0 %v3002_v48  ;;  %v3485_v48 = vand.u32 4294901760, %v3066_v2  ;;  %v1253_v9 = vand.u32 4294901760, %v3265_v38 }
 0x185   : > { %1439 = vmatpush.msrb.mxu1 %v3046_v54  ;;  %1496 = vmatpush.msrb.mxu2 %v3484_v10  ;;  %v2406_v10 = vld [vmem:[%s3440_s6 + $0x8] sm:$0xff] }
 0x186   : > { %1553 = vmatpush.msrb.mxu3 %v3013_v49  ;;  %884 = vmatmul.f32.gmra.mxu0 %v883_v5  ;;  %v3486_v49 = vand.u32 4294901760, %v3078_v3 }
 0x187   : > { %1203 = vmatmul.f32.vlgmr.msra.gmra.mxu1 %v3211_v56  ;;  %1379 = vmatpush.msrb.mxu0 %v3016_v55  ;;  %v3487_v55 = vand.u32 4294901760, %v3092_v25 }
 0x188   : > { %1441 = vmatpush.msrb.mxu1 %v3062_v19  ;;  %1500 = vmatpush.msrb.mxu2 %v3485_v48 }
 0x189   : > { %1555 = vmatpush.msrb.mxu3 %v3027_v32  ;;  %1248 = vmatmul.f32.vlgmr.msra.gmra.mxu2 %v1247_v57  ;;  %v1254_v32 = vsub.f32 %v3265_v38, %v1253_v9 }
 0x18a   : > { %1382 = vmatpush.msrb.mxu0 %v3030_v53  ;;  %1443 = vmatpush.msrb.mxu1 %v3075_v44  ;;  %v3488_v53 = vand.u32 4294901760, %v3111_v45 }
 0x18b   : > { %1504 = vmatpush.msrb.mxu2 %v3486_v49  ;;  %1557 = vmatpush.msrb.mxu3 %v3046_v54  ;;  %v1255_v54 = vand.u32 4294901760, %v1254_v32 }
 0x18c   : > { %1357 = vmatmul.f32.vlgmr.msra.gmra.mxu3 %v3222_v20  ;;  %1385 = vmatpush.msrb.mxu0 %v3049_v33  ;;  %v3490_v33 = vand.u32 4294901760, %v3142_v35 }
 0x18d   : > { %1445 = vmatpush.msrb.mxu1 %v3089_v1  ;;  %1508 = vmatpush.msrb.mxu2 %v3487_v55 }
 0x18e   : > { %1559 = vmatpush.msrb.mxu3 %v3062_v19  ;;  %1388 = vmatpush.msrb.mxu0 %v3066_v2  ;;  %v3489_v19 = vand.u32 4294901760, %v3130_v34  ;;  %v3491_v2 = vand.u32 4294901760, %v3156_v12 }
 0x18f   : > { %1447 = vmatpush.msrb.mxu1 %v3108_v30  ;;  %1512 = vmatpush.msrb.mxu2 %v3488_v53 }
 0x190   : > { %1561 = vmatpush.msrb.mxu3 %v3075_v44  ;;  %1162 = vmatmul.f32.vlgmr.msra.gmra.mxu0 %v3211_v56  ;;  %v3492_v44 = vand.u32 4294901760, %v3175_v29 }
 0x191   : > { %1207 = vmatmul.f32.gmra.mxu1 %v3227_v52  ;;  %1391 = vmatpush.msrb.mxu0 %v3078_v3 }
 0x192   : > { %1449 = vmatpush.msrb.mxu1 %v3124_v59  ;;  %1516 = vmatpush.msrb.mxu2 %v3489_v19 }
 0x193   : > { %1563 = vmatpush.msrb.mxu3 %v3089_v1  ;;  %1256 = vmatmul.f32.gmra.mxu2 %v1255_v54  ;;  %v3310_v1 = vand.u32 4294901760, %v2670_v16 }
 0x194   : > { %1394 = vmatpush.msrb.mxu0 %v3092_v25  ;;  %1451 = vmatpush.msrb.mxu1 %v3139_v39  ;;  %v3494_v25 = vld [vmem:[#allocation7_spill] sm:$0xff] }
 0x195   : > { %1520 = vmatpush.msrb.mxu2 %v3490_v33  ;;  %1565 = vmatpush.msrb.mxu3 %v3108_v30  ;;  %v1645_v3 = vsub.f32 %v2670_v16, %v3310_v1  ;;  %v3333_v30 = vand.u32 4294901760, %v3494_v25  ;;  %v3344_v16 = vpop.f32.mrf.mxu0 }
 0x196   : > { %1361 = vmatmul.f32.gmra.mxu3 %v3250_v0  ;;  %1397 = vmatpush.msrb.mxu0 %v3111_v45  ;;  %v3346_v45 = vpop.f32.mrf.mxu1 }
 0x197   : > { %1453 = vmatpush.msrb.mxu1 %v3153_v50  ;;  %1524 = vmatpush.msrb.mxu2 %v3491_v2  ;;  %v1646_v58 = vand.u32 4294901760, %v1645_v3 }
 0x198   : > { %1567 = vmatpush.msrb.mxu3 %v3124_v59  ;;  %1400 = vmatpush.msrb.mxu0 %v3130_v34  ;;  %v3493_v59 = vand.u32 4294901760, %v3186_v7  ;;  %v3350_v34 = vpop.f32.mrf.mxu3 }
 0x199   : > { %1455 = vmatpush.msrb.mxu1 %v3172_v46  ;;  %1528 = vmatpush.msrb.mxu2 %v3492_v44  ;;  %v1647_v21 = vsub.f32 %v1645_v3, %v1646_v58 }
 0x19a   : > { %1569 = vmatpush.msrb.mxu3 %v3139_v39  ;;  %1166 = vmatmul.f32.gmra.mxu0 %v3227_v52 }
 0x19b   : > { %1459 = vmatmul.f32.vlgmr.msrb.gmra.mxu1 %v1245_v22  ;;  %1403 = vmatpush.msrb.mxu0 %v3142_v35  ;;  %v1648_v24 = vand.u32 4294901760, %v1647_v21 }
 0x19c   : > { %1532 = vmatpush.msrb.mxu2 %v3493_v59  ;;  %1571 = vmatpush.msrb.mxu3 %v3153_v50  ;;  %v3348_v50 = vpop.f32.mrf.mxu2 }
 0x19d   : > { %1534 = vmatmul.f32.vlgmr.msrb.gmra.mxu2 %v3222_v20  ;;  %1406 = vmatpush.msrb.mxu0 %v3156_v12 }
 0x19e   : > { %1573 = vmatpush.msrb.mxu3 %v3172_v46  ;;  %1677 = vmatpush.msra.mxu2 %v1645_v3 }
 0x19f   : > { %1575 = vmatmul.f32.vlgmr.msrb.gmra.mxu3 %v3222_v20  ;;  %1409 = vmatpush.msrb.mxu0 %v3175_v29  ;;  %v2404_v20 = vld [vmem:[%s3440_s6] sm:$0xff] }
 0x1a0   : > { %1702 = vmatpush.msra.mxu3 %v3310_v1  ;;  %v1651_v26 = vsub.f32 %v2404_v20, %v3333_v30  ;;  %1649 = vmatpush.msra.mxu1 %v1648_v24 }
 0x1a1   : > { %1412 = vmatpush.msrb.mxu0 %v3186_v7 }
 0x1a2   : > { %1415 = vmatmul.f32.vlgmr.msrb.gmra.mxu0 %v3235_v8  ;;  %1704 = vmatpush.msra.mxu3 %v3333_v30  ;;  %v1652_v28 = vand.u32 4294901760, %v1651_v26 }
 0x1a3   : > { %1465 = vmatmul.f32.gmra.mxu1 %v1253_v9  ;;  %1618 = vmatpush.msra.mxu0 %v3310_v1 }
 0x1a4   : > { %1680 = vmatpush.msra.mxu2 %v1651_v26  ;;  %v1653_v8 = vsub.f32 %v1651_v26, %v1652_v28 }
 0x1a5   : > { %1538 = vmatmul.f32.gmra.mxu2 %v3250_v0  ;;  %1620 = vmatpush.msra.mxu0 %v3333_v30 }
 0x1a6   : > { %v1654_v11 = vand.u32 4294901760, %v1653_v8 }
 0x1a7   : > { %1579 = vmatmul.f32.gmra.mxu3 %v3250_v0  ;;  %1729 = vmatpush.msrb.mxu0 %v1646_v58  ;;  %v2405_v0 = vld [vmem:[%s3440_s6 + $0x18] sm:$0xff] }
 0x1a8   : > { %1655 = vmatpush.msra.mxu1 %v1654_v11  ;;  %v3359_v5 = vand.u32 4294901760, %v2405_v0 }
 0x1a9   : > { %1733 = vmatpush.msrb.mxu0 %v1652_v28 }
 0x1aa   : > { %1420 = vmatmul.f32.gmra.mxu0 %v3265_v38  ;;  %1754 = vmatpush.msrb.mxu1 %v3310_v1  ;;  %v1778_v38 = vand.u32 4294901760, %v2406_v10  ;;  %v3367_v57 = vsub.f32 %v2405_v0, %v3359_v5 }
 0x1ab   : > { %1777 = vmatpush.msrb.mxu2 %v3359_v5 }
 0x1ac   : > { %1756 = vmatpush.msrb.mxu1 %v3333_v30  ;;  %v1805_v55 = vand.u32 4294901760, %v3367_v57  ;;  %v1810_v32 = vsub.f32 %v2406_v10, %v1778_v38 }
 0x1ad   : > { %1779 = vmatpush.msrb.mxu2 %v1778_v38 }
 0x1ae   : > { %v1806_v19 = vsub.f32 %v3367_v57, %v1805_v55  ;;  %v1811_v33 = vand.u32 4294901760, %v1810_v32 }
 0x1b0   : > { %v1807_v1 = vand.u32 4294901760, %v1806_v19  ;;  %v1812_v44 = vsub.f32 %v1810_v32, %v1811_v33 }
 0x1b2   : > { %1808 = vmatpush.msrb.mxu3 %v1807_v1  ;;  %v1813_v25 = vand.u32 4294901760, %v1812_v44 }
 0x1b4   : > { %1814 = vmatpush.msrb.mxu3 %v1813_v25 }
 0x1f1   : > { %v986_v39 = vpop.f32.mrf.mxu1 }
 0x1f9   : > { %v877_v35 = vpop.f32.mrf.mxu0  ;;  %v1044_v7 = vpop.f32.mrf.mxu2 }
 0x1fa   : > { %v990_v46 = vpop.f32.mrf.mxu1  ;;  %v987_v17 = vadd.f32 %v986_v39, %v877_v35 }
 0x1fb   : > { %v1088_v12 = vpop.f32.mrf.mxu3 }
 0x1fc   : > { %v1045_v31 = vadd.f32 %v1044_v7, %v987_v17 }
 0x1fe   : > { %v1089_v42 = vadd.f32 %v1088_v12, %v1045_v31 }
 0x202   : > { %v1049_v36 = vpop.f32.mrf.mxu2 }
 0x203   : > { %v885_v29 = vpop.f32.mrf.mxu0 }
 0x204   : > { %v1204_v40 = vpop.f32.mrf.mxu1  ;;  %v991_v43 = vadd.f32 %v990_v46, %v885_v29 }
 0x205   : > { %v1094_v37 = vpop.f32.mrf.mxu3 }
 0x206   : > { %v1050_v6 = vadd.f32 %v1049_v36, %v991_v43 }
 0x208   : > { %v1095_v15 = vadd.f32 %v1094_v37, %v1050_v6 }
 0x20c   : > { %v1249_v62 = vpop.f32.mrf.mxu2 }
 0x20d   : > { %v1163_v56 = vpop.f32.mrf.mxu0 }
 0x20e   : > { %v1164_v18 = vadd.f32 %v1163_v56, %v1089_v42  ;;  %v1208_v13 = vpop.f32.mrf.mxu1 }
 0x20f   : > { %v1358_v60 = vpop.f32.mrf.mxu3 }
 0x210   : > { %v1205_v27 = vadd.f32 %v1204_v40, %v1164_v18  ;;  %v1926_v18 = vld [vmem:[%s3438_s4] sm:$0xff] }
 0x211   : > { %1929 = vperm.xlu2 %2397, %v1926_v18  }
 0x212   : > { %v1250_v52 = vadd.f32 %v1249_v62, %v1205_v27 }
 0x214   : > { %v1359_v23 = vadd.f32 %v1358_v60, %v1250_v52  ;;  %v1925_v52 = vld [vmem:[%s3437_s3] sm:$0xff] }
 0x215   : > { %v1933_v21 = vsel %vm331_vm0, %v1925_v52, 0 }
 0x216   : > { %v1257_v61 = vpop.f32.mrf.mxu2 }
 0x217   : > { %v1167_v41 = vpop.f32.mrf.mxu0 }
 0x218   : > { %v1168_v4 = vadd.f32 %v1167_v41, %v1095_v15  ;;  %v1460_v63 = vpop.f32.mrf.mxu1 }
 0x219   : > { %v1362_v51 = vpop.f32.mrf.mxu3 }
 0x21a   : > { %v1209_v48 = vadd.f32 %v1208_v13, %v1168_v4 }
 0x21c   : > { %v1258_v2 = vadd.f32 %v1257_v61, %v1209_v48  ;;  %v3496_v48 = vld [vmem:[#allocation5_spill] sm:$0xff] }
 0x21e   : > { %v1363_v59 = vadd.f32 %v1362_v51, %v1258_v2  ;;  %v3382_v51 = vand.u32 4294901760, %v1933_v21 }
 0x21f   : > { %v1416_v22 = vpop.f32.mrf.mxu0 }
 0x220   : > { %v1417_v47 = vadd.f32 %v1416_v22, %v1359_v23  ;;  %v1535_v9 = vpop.f32.mrf.mxu2  ;;  %v1466_v7 = vpop.f32.mrf.mxu1  ;;  %v1953_v11 = vsub.f32 %v1933_v21, %v3382_v51 }
 0x222   : > { %v1461_v14 = vadd.f32 %v1460_v63, %v1417_v47  ;;  %v1576_v53 = vpop.f32.mrf.mxu3  ;;  %v1954_v22 = vand.u32 4294901760, %v1953_v11  ;;  %v3495_v63 = vld [vmem:[#allocation6_spill] sm:$0xff] }
 0x224   : > { %v1536_v49 = vadd.f32 %v1535_v9, %v1461_v14  ;;  %v657_v14 = vadd.f32 %v3344_v16, %v3495_v63  ;;  %v1921_v9 = vmax.f32 %v3496_v48, 0.0 }
 0x226   : > { %v1577_v54 = vadd.f32 %v1576_v53, %v1536_v49  ;;  %v693_v49 = vadd.f32 %v3346_v45, %v657_v14 }
 0x227   : > { %v1421_v3 = vpop.f32.mrf.mxu0 }
 0x228   : > { %2402 = vrcp.f32 %v1577_v54  ;;  %v1422_v39 = vadd.f32 %v1421_v3, %v1363_v59  ;;  %v1594_v29 = vand.u32 2147483648, %v1577_v54  ;;  %v1592_v37 = vand.u32 2147483647, %v1577_v54  ;;  %v1539_v17 = vpop.f32.mrf.mxu2 }
 0x229   : > { %vm1588_vm6 = vweird.f32 %v1577_v54  ;;  %v725_v19 = vadd.f32 %v3348_v50, %v693_v49 }
 0x22a   : > { %v1467_v46 = vadd.f32 %v1466_v7, %v1422_v39  ;;  %v1595_v56 = vor.u32 1.1754944e-38, %v1594_v29  ;;  %vm1593_vm8 = vcmp.eq.f32.partialorder %v1592_v37, 8.507059e+37  ;;  %v1580_v42 = vpop.f32.mrf.mxu3 }
 0x22b   : > { %v755_v59 = vadd.f32 %v3350_v34, %v725_v19 }
 0x22c   : > { %v1540_v31 = vadd.f32 %v1539_v17, %v1467_v46 }
 0x22d   : > { %v1922_v7 = vmax.f32 %v755_v59, 0.0 }
 0x22e   : > { %v2403_v30 = vpop.eup %2402  ;;  %v1581_v43 = vadd.f32 %v1580_v42, %v1540_v31 }
 0x22f   : > { %v1584_v35 = vmul.f32 %v2403_v30, %v1577_v54  ;;  %vm1589_vm5 = vweird.f32 %v2403_v30 }
 0x230   : > { %vm1590_vm7 = vmor %vm1588_vm6, %vm1589_vm5 }
 0x231   : > { %v1585_v12 = vsub.f32 1.0, %v1584_v35 }
 0x233   : > { %v1586_v36 = vmul.f32 %v2403_v30, %v1585_v12 }
 0x235   : > { %v1587_v40 = vadd.f32 %v2403_v30, %v1586_v36 }
 0x237   : > { %v1591_v62 = vsel %vm1590_vm7, %v2403_v30, %v1587_v40 }
 0x238   : > { %v1596_v60 = vsel %vm1593_vm8, %v1595_v56, %v1591_v62 }
 0x239   : > { %v1597_v27 = vperm.slane %v1596_v60, 1 }
 0x23b   : > { %v1598_v13 = vmul.f32 %v1597_v27, %v1581_v43 }
 0x23d   : > { %v1601_v41 = vsel %vm1599_vm9, %v1598_v13, 0 }
 0x23e   : > { %v1621_v58 = vand.u32 4294901760, %v1601_v41 }
 0x240   : > { %v1622_v20 = vsub.f32 %v1601_v41, %v1621_v58  ;;  %1657 = vmatmul.f32.vlgmr.msra.gmra.mxu1 %v1621_v58 }
 0x241   : > { %1861 = vmatpush.msra.mxu1 %v3359_v5 }
 0x242   : > { %1683 = vmatmul.f32.vlgmr.msra.gmra.mxu2 %v1622_v20  ;;  %v1623_v26 = vand.u32 4294901760, %v1622_v20 }
 0x243   : > { %1863 = vmatpush.msra.mxu1 %v1778_v38  ;;  %1888 = vmatpush.msra.mxu2 %v1805_v55 }
 0x244   : > { %1708 = vmatmul.f32.vlgmr.msra.gmra.mxu3 %v1623_v26  ;;  %v1624_v6 = vsub.f32 %v1622_v20, %v1623_v26 }
 0x245   : > { %1892 = vmatpush.msra.mxu2 %v1811_v33  ;;  %1913 = vmatpush.msra.mxu3 %v3359_v5 }
 0x246   : > { %v1625_v61 = vand.u32 4294901760, %v1624_v6 }
 0x247   : > { %1915 = vmatpush.msra.mxu3 %v1778_v38 }
 0x248   : > { %1626 = vmatmul.f32.vlgmr.msra.gmra.mxu0 %v1625_v61  ;;  %1758 = vmatmul.f32.vlgmr.msrb.gmra.mxu1 %v1621_v58 }
 0x249   : > { %1836 = vmatpush.msra.mxu0 %v3367_v57  ;;  %v1955_v57 = vsub.f32 %v1953_v11, %v1954_v22 }
 0x24a   : > { %1785 = vmatmul.f32.vlgmr.msrb.gmra.mxu2 %v1625_v61 }
 0x24b   : > { %1839 = vmatpush.msra.mxu0 %v1810_v32  ;;  %v1956_v54 = vand.u32 4294901760, %v1955_v57 }
 0x24c   : > { %1816 = vmatmul.f32.vlgmr.msrb.gmra.mxu3 %v1621_v58 }
 0x250   : > { %1735 = vmatmul.f32.vlgmr.msrb.gmra.mxu0 %v1621_v58  ;;  %1867 = vmatmul.f32.vlgmr.msra.gmra.mxu1 %v1623_v26 }
 0x252   : > { %1894 = vmatmul.f32.vlgmr.msra.gmra.mxu2 %v1621_v58 }
 0x254   : > { %1917 = vmatmul.f32.vlgmr.msra.gmra.mxu3 %v1621_v58 }
 0x258   : > { %1842 = vmatmul.f32.vlgmr.msra.gmra.mxu0 %v1622_v20 }
 0x26b   : > { %v1930_v56 = vpop.permute.xlu2 %1929 }
 0x2bd   : > { %v1658_v28 = vpop.f32.mrf.mxu1 }
 0x2c5   : > { %v1627_v24 = vpop.f32.mrf.mxu0  ;;  %v1684_v8 = vpop.f32.mrf.mxu2 }
 0x2c6   : > { %v1659_v15 = vadd.f32 %v1658_v28, %v1627_v24  ;;  %v1759_v0 = vpop.f32.mrf.mxu1 }
 0x2c7   : > { %v1709_v23 = vpop.f32.mrf.mxu3 }
 0x2c8   : > { %v1685_v4 = vadd.f32 %v1684_v8, %v1659_v15 }
 0x2ca   : > { %v1710_v47 = vadd.f32 %v1709_v23, %v1685_v4 }
 0x2cd   : > { %v1736_v5 = vpop.f32.mrf.mxu0  ;;  %v1786_v38 = vpop.f32.mrf.mxu2 }
 0x2ce   : > { %v1737_v10 = vadd.f32 %v1736_v5, %v1710_v47  ;;  %v1868_v16 = vpop.f32.mrf.mxu1 }
 0x2cf   : > { %v1817_v32 = vpop.f32.mrf.mxu3 }
 0x2d0   : > { %v1760_v55 = vadd.f32 %v1759_v0, %v1737_v10  ;;  %v1818_v2 = vadd.f32 %v1817_v32, %v1786_v38 }
 0x2d2   : > { %v1923_v53 = vmul.f32 %v1921_v9, %v1760_v55 }
 0x2d4   : > { %v1950_v33 = vand.u32 4294901760, %v1923_v53 }
 0x2d5   : > { %v1843_v1 = vpop.f32.mrf.mxu0  ;;  %v1895_v39 = vpop.f32.mrf.mxu2 }
 0x2d6   : > { %v1977_v44 = vsub.f32 %v1923_v53, %v1950_v33  ;;  %v1844_v3 = vadd.f32 %v1843_v1, %v1818_v2  ;;  %1951 = vmatpush.msrb.mxu0 %v1950_v33  ;;  %2027 = vmatpush.msrb.mxu3 %v1950_v33 }
 0x2d7   : > { %1957 = vmatmul.f32.vlgmr.msrb.gmra.mxu0 %v1956_v54  ;;  %2031 = vmatmul.f32.vlgmr.msrb.gmra.mxu3 %v1954_v22  ;;  %v1918_v35 = vpop.f32.mrf.mxu3 }
 0x2d8   : > { %v1869_v25 = vadd.f32 %v1868_v16, %v1844_v3  ;;  %2004 = vmatpush.msrb.mxu2 %v1977_v44  ;;  %v1978_v45 = vand.u32 4294901760, %v1977_v44 }
 0x2d9   : > { %2007 = vmatmul.f32.vlgmr.msrb.gmra.mxu2 %v1953_v11 }
 0x2da   : > { %v1896_v30 = vadd.f32 %v1895_v39, %v1869_v25  ;;  %2053 = vmatpush.msra.mxu0 %v1978_v45  ;;  %v1979_v50 = vsub.f32 %v1977_v44, %v1978_v45 }
 0x2dc   : > { %v1919_v12 = vadd.f32 %v1918_v35, %v1896_v30  ;;  %v1980_v46 = vand.u32 4294901760, %v1979_v50 }
 0x2de   : > { %v1924_v29 = vmul.f32 %v1922_v7, %v1919_v12  ;;  %1981 = vmatpush.msrb.mxu1 %v1980_v46 }
 0x2df   : > { %1983 = vmatmul.f32.vlgmr.msrb.gmra.mxu1 %v3382_v51  ;;  %2055 = vmatmul.f32.vlgmr.msra.gmra.mxu0 %v3382_v51 }
 0x2e0   : > { %v2096_v36 = vand.u32 4294901760, %v1924_v29  ;;  %2075 = vmatpush.msra.mxu1 %v1950_v33 }
 0x2e2   : > { %v2123_v34 = vsub.f32 %v1924_v29, %v2096_v36  ;;  %2097 = vmatpush.msra.mxu2 %v2096_v36  ;;  %2173 = vmatpush.msrb.mxu1 %v2096_v36 }
 0x2e3   : > { %2103 = vmatmul.f32.vlgmr.msra.gmra.mxu2 %v1956_v54 }
 0x2e4   : > { %2150 = vmatpush.msrb.mxu0 %v2123_v34  ;;  %v2124_v37 = vand.u32 4294901760, %v2123_v34 }
 0x2e6   : > { %2199 = vmatpush.msrb.mxu2 %v2124_v37  ;;  %v2125_v17 = vsub.f32 %v2123_v34, %v2124_v37 }
 0x2e7   : > { %2077 = vmatmul.f32.vlgmr.msra.gmra.mxu1 %v3382_v51  ;;  %2153 = vmatmul.f32.vlgmr.msrb.gmra.mxu0 %v1953_v11 }
 0x2e8   : > { %v2126_v31 = vand.u32 4294901760, %v2125_v17 }
 0x2ea   : > { %2127 = vmatpush.msra.mxu3 %v2126_v31 }
 0x2eb   : > { %2129 = vmatmul.f32.vlgmr.msra.gmra.mxu3 %v3382_v51  ;;  %2201 = vmatmul.f32.vlgmr.msrb.gmra.mxu2 %v3382_v51 }
 0x2ec   : > { %2221 = vmatpush.msrb.mxu3 %v2096_v36 }
 0x2ef   : > { %2177 = vmatmul.f32.vlgmr.msrb.gmra.mxu1 %v1954_v22 }
 0x2f3   : > { %2223 = vmatmul.f32.vlgmr.msrb.gmra.mxu3 %v3382_v51 }
 0x354   : > { %v1958_v40 = vpop.f32.mrf.mxu0 }
 0x355   : > { %v1959_v62 = vadd.f32 %v1958_v40, %v1930_v56 }
 0x35a   : > { %v2032_v43 = vpop.f32.mrf.mxu3 }
 0x35c   : > { %v1984_v42 = vpop.f32.mrf.mxu1  ;;  %v2008_v60 = vpop.f32.mrf.mxu2 }
 0x35d   : > { %v1985_v18 = vadd.f32 %v1984_v42, %v1959_v62  ;;  %v2056_v13 = vpop.f32.mrf.mxu0 }
 0x35f   : > { %v2009_v27 = vadd.f32 %v2008_v60, %v1985_v18 }
 0x361   : > { %v2033_v41 = vadd.f32 %v2032_v43, %v2009_v27 }
 0x363   : > { %v2057_v58 = vadd.f32 %v2056_v13, %v2033_v41 }
 0x364   : > { %v2078_v20 = vpop.f32.mrf.mxu1 }
 0x365   : > { %v2079_v26 = vadd.f32 %v2078_v20, %v2057_v58  ;;  %v2154_v21 = vpop.f32.mrf.mxu0 }
 0x366   : > { %v2104_v6 = vpop.f32.mrf.mxu2 }
 0x367   : > { %2227 = vst [vmem:[%s296_s8] sm:$0xff] %v2079_v26  ;;  %v2105_v61 = vadd.f32 %v2104_v6, %v1930_v56 }
 0x36c   : > { %v2178_v51 = vpop.f32.mrf.mxu1 }
 0x36e   : > { %v2130_v52 = vpop.f32.mrf.mxu3  ;;  %v2202_v8 = vpop.f32.mrf.mxu2 }
 0x36f   : > { %v2131_v28 = vadd.f32 %v2130_v52, %v2105_v61 }
 0x371   : > { %v2155_v24 = vadd.f32 %v2154_v21, %v2131_v28 }
 0x373   : > { %v2179_v15 = vadd.f32 %v2178_v51, %v2155_v24 }
 0x375   : > { %v2203_v23 = vadd.f32 %v2202_v8, %v2179_v15 }
 0x376   : > { %v2224_v11 = vpop.f32.mrf.mxu3 }
 0x377   : > { %v2225_v4 = vadd.f32 %v2224_v11, %v2203_v23 }
 0x379   : > { %2228 = vst [vmem:[%s296_s8 + $0x8] sm:$0xff] %v2225_v4 }
 0x37a   : > { %2434 = shalt.err (!%p2431_p5)
}
 0x37b   : > { %2339 = dma.vmem_to_hbm [thread:$0]  (%p2568_p4), %s2246_s17, 256, %s2248_s18, %s2230_s19  }
 0x37c PF: > { %p2345_p6 = scmp.ge.s32.totalorder %s2485_s29, 2  ;;  %s2259_s23 = sand.u32 1, %s2465_s24  }
 0x37d   : > { %s2260_s8 = scalar_lea.sflag [#allocation3], %s2259_s23 }
 0x37e   : > { %p2342_p7 = pnand %p2345_p6, %p2575_p8 }
 0x380   : > { %p2343_p9 = pneg %p2342_p7 }
 0x382   : > { %2460 = dma.done.wait (%p2343_p9), %s2260_s8, 256  }
 0x383   : > { %2462 = vsyncadd (%p2343_p9), %s2260_s8, 4294967040  ;;  %s20_s29 = sadd.s32 1, %s2485_s29   ;;  %s3497_s24 = smov %s2469_s25 }
 0x384   : > { %p17_p10 = scmp.ge.s32.totalorder %s20_s29, 4   ;;  %s3498_s25 = smov %s2473_s26 }
 0x385   : > { %s3499_s26 = smov %s2581_s14  ;;  %s3500_s27 = smov %s2481_s28 }
 0x386   : > { %s3501_s28 = smov %s3503_s9  ;;  %19 = sbr.rel (!%p17_p10) target bundleno = 4 (0x4), region = 83 }
 0x38b   :  { %2266 = vsyncpa [#allocation3], 1 }
 0x38c   :  { %2268 = vsyncpa [#allocation3 + $0x1], 1 }

</bundles_post_ra>
